<compile_context>
chip_gen: v7x
topology: tpu7x:2x2x1
jax: 0.10.0
libtpu: 0.0.40
codegen_flags: <defaults>
</compile_context>

<pallas_src>
import jax
import jax.numpy as jnp
from jax import lax
from jax.experimental import pallas as pl
from jax.experimental.pallas import tpu as pltpu


# ----------------------------------------------------------------------------
# Phases 1 & 3: (M,K) x (K,N) + bias GEMM, parallel over M row tiles.
# Weights / bias are passed untiled in VMEM (single-buffered: they never change).
# ----------------------------------------------------------------------------
def _matmul_bias_kernel(a_ref, b_ref, bias_ref, o_ref):
    o_ref[...] = (
        jnp.dot(a_ref[...], b_ref[...], preferred_element_type=jnp.float32)
        + bias_ref[...]
    )


def _matmul_bias(a, b, bias):
    M, K = a.shape
    _, N = b.shape
    tm = 256 if (M > 1024 and M % 256 == 0) else M   # full-M block at small scale
    return pl.pallas_call(
        _matmul_bias_kernel,
        out_shape=jax.ShapeDtypeStruct((M, N), jnp.float32),
        grid_spec=pltpu.PrefetchScalarGridSpec(
            num_scalar_prefetch=0,
            grid=(M // tm,),
            in_specs=[
                pl.BlockSpec((tm, K), lambda i: (i, 0)),            # activations (row tiles)
                pl.BlockSpec(memory_space=pltpu.MemorySpace.VMEM),  # weights, single-buffered
                pl.BlockSpec(memory_space=pltpu.MemorySpace.VMEM),  # bias, single-buffered
            ],
            out_specs=pl.BlockSpec((tm, N), lambda i: (i, 0)),
        ),
        compiler_params=pltpu.CompilerParams(dimension_semantics=("parallel",)),
    )(a, b, bias)


# ----------------------------------------------------------------------------
# Phase 2: GRU recurrence.  One grid step processes Tt consecutive time steps for
# one batch tile; the time axis is sequential ("arbitrary"), the batch axis is
# independent ("parallel", megacore-shardable on v7x).
# ----------------------------------------------------------------------------
def _gru_recurrence_kernel(lens_ref, gi_ref, h0_ref, whh_ref, bhh_ref,
                           hseq_ref, h_scr):
    t_blk = pl.program_id(1)
    Tt = gi_ref.shape[0]
    H = whh_ref.shape[0]

    @pl.when(t_blk == 0)
    def _():
        h_scr[...] = h0_ref[...]            # (Bb, H) initial hidden state for this batch tile

    lens = lens_ref[...]                    # (Bb, 1) int32 sequence lengths
    whh = whh_ref[...]                      # (H, 3H) bf16, fused gate order [r | z | n]
    bhh = bhh_ref[...]                      # (1, 3H) f32
    t0 = t_blk * Tt

    def step(i, h):
        gi = gi_ref[i]                      # (Bb, 3H) = x_t @ W_ih + b_ih (precomputed, phase 1)
        gh = jnp.dot(h.astype(whh.dtype), whh,
                     preferred_element_type=jnp.float32) + bhh
        r = jax.nn.sigmoid(gi[:, 0:H] + gh[:, 0:H])
        z = jax.nn.sigmoid(gi[:, H:2 * H] + gh[:, H:2 * H])
        n = jnp.tanh(gi[:, 2 * H:3 * H] + r * gh[:, 2 * H:3 * H])
        h_new = (1.0 - z) * n + z * h
        # pack_padded_sequence semantics: state frozen past the sequence length
        m = ((t0 + i) < lens).astype(jnp.float32)          # (Bb, 1)
        h_upd = m * h_new + (1.0 - m) * h
        # pad_packed_sequence semantics: padded output positions are zero
        hseq_ref[i] = m * h_upd
        return h_upd

    h_scr[...] = lax.fori_loop(0, Tt, step, h_scr[...], unroll=True)


def _pick_time_block(S):
    # Amortize ~0.35 us per-grid-step overhead over many steps, but bound the gi block size.
    for cand in (32, 16, 8):
        if S >= cand and S % cand == 0:
            return cand
    return S


def _pick_batch_tile(B):
    # v7x megacore: shard the recurrence across TensorCores when batch allows (multiple of 8).
    if B >= 16 and B % 16 == 0:
        return B // 2
    return B


def _gru_recurrence(lengths, gi, h0, w_hh, b_hh):
    S, B, threeH = gi.shape
    H = w_hh.shape[0]
    Tt = _pick_time_block(S)
    Bb = _pick_batch_tile(B)
    return pl.pallas_call(
        _gru_recurrence_kernel,
        out_shape=jax.ShapeDtypeStruct((S, B, H), jnp.float32),
        grid_spec=pltpu.PrefetchScalarGridSpec(
            num_scalar_prefetch=0,
            grid=(B // Bb, S // Tt),
            in_specs=[
                pl.BlockSpec((Bb, 1), lambda b, t: (b, 0)),              # lengths (B,1)
                pl.BlockSpec((Tt, Bb, threeH), lambda b, t: (t, b, 0)),  # gi (S,B,3H)
                pl.BlockSpec((Bb, H), lambda b, t: (b, 0)),              # h0 (B,H)
                pl.BlockSpec(memory_space=pltpu.MemorySpace.VMEM),       # w_hh, single-buffered
                pl.BlockSpec(memory_space=pltpu.MemorySpace.VMEM),       # b_hh, single-buffered
            ],
            out_specs=pl.BlockSpec((Tt, Bb, H), lambda b, t: (t, b, 0)),
            scratch_shapes=[pltpu.VMEM((Bb, H), jnp.float32)],           # carried hidden state
        ),
        compiler_params=pltpu.CompilerParams(
            dimension_semantics=("parallel", "arbitrary"),
        ),
    )(lengths, gi, h0, w_hh, b_hh)


# ----------------------------------------------------------------------------
# Wrapper (transposes, h0 reduction, dtype casts stay in plain JAX)
# ----------------------------------------------------------------------------
@jax.jit
def transformer_rnn_forward(x_bsd, h_stack, attn_mask, params):
    """x_bsd: (B,S,D) bert hidden_states[0]; h_stack: (L,B,S,D) hidden_states[1:];
    attn_mask: (B,S) int. Returns logits (B,S,C)."""
    B, S, D = x_bsd.shape
    H = params["w_hh"].shape[0]
    C = params["w_cls"].shape[1]

    lengths = jnp.sum(attn_mask, axis=1).astype(jnp.int32).reshape(B, 1)
    # previous_hidden_states_type == 'mean_hidden_state': mean over sequence dim; layer 0 (L==1)
    h0 = jnp.mean(h_stack, axis=2)[0].astype(jnp.float32)                # (B, H)

    # bf16 weights for MXU throughput; every matmul accumulates in f32.
    w_ih = params["w_ih"].astype(jnp.bfloat16)    # (D, 3H), fused gate order [r | z | n]
    w_hh = params["w_hh"].astype(jnp.bfloat16)    # (H, 3H)
    w_cls = params["w_cls"].astype(jnp.bfloat16)  # (H, C)
    b_ih = params["b_ih"].astype(jnp.float32)
    b_hh = params["b_hh"].astype(jnp.float32)
    b_cls = params["b_cls"].astype(jnp.float32)

    # Phase 1: input projection hoisted out of the recurrence (one big GEMM over all steps).
    x_sbd = jnp.transpose(x_bsd, (1, 0, 2))                              # time-major (S, B, D)
    gi = _matmul_bias(x_sbd.reshape(S * B, D).astype(jnp.bfloat16), w_ih, b_ih)
    gi = gi.reshape(S, B, 3 * H)

    # Phase 2: sequential GRU recurrence (masked outputs are already zeroed at padded steps).
    h_seq = _gru_recurrence(lengths, gi, h0, w_hh, b_hh)                 # (S, B, H)

    # Phase 3: classifier as one big lane-dense GEMM (padded positions -> bias only, as in
    # applying Linear to pad_packed's zero outputs).
    logits = _matmul_bias(h_seq.reshape(S * B, H).astype(jnp.bfloat16), w_cls, b_cls)
    # TODO(synk): pad_packed_sequence pads to max(lengths); here the output length is S
    # (exact when at least one sequence spans the full window, as in the test inputs).
    return jnp.transpose(logits.reshape(S, B, C), (1, 0, 2))             # (B, S, C)


# ----------------------------------------------------------------------------
# Pure-JAX reference (same math / same bf16 casts, lax.scan) for correctness
# ----------------------------------------------------------------------------
def reference_forward(x_bsd, h_stack, attn_mask, params):
    B, S, D = x_bsd.shape
    H = params["w_hh"].shape[0]
    lengths = jnp.sum(attn_mask, axis=1)
    h0 = jnp.mean(h_stack, axis=2)[0].astype(jnp.float32)

    w_ih = params["w_ih"].astype(jnp.bfloat16)
    w_hh = params["w_hh"].astype(jnp.bfloat16)
    w_cls = params["w_cls"].astype(jnp.bfloat16)
    b_ih = params["b_ih"].astype(jnp.float32)
    b_hh = params["b_hh"].astype(jnp.float32)
    b_cls = params["b_cls"].astype(jnp.float32)

    xs = jnp.transpose(x_bsd, (1, 0, 2))                                 # (S, B, D)
    gi_all = (jnp.dot(xs.reshape(S * B, D).astype(jnp.bfloat16), w_ih,
                      preferred_element_type=jnp.float32) + b_ih).reshape(S, B, 3 * H)
    ms = (jnp.arange(S)[:, None] < lengths[None, :]).astype(jnp.float32)[:, :, None]  # (S,B,1)

    def step(h, inp):
        gi, m = inp
        gh = jnp.dot(h.astype(jnp.bfloat16), w_hh, preferred_element_type=jnp.float32) + b_hh
        r = jax.nn.sigmoid(gi[:, 0:H] + gh[:, 0:H])
        z = jax.nn.sigmoid(gi[:, H:2 * H] + gh[:, H:2 * H])
        n = jnp.tanh(gi[:, 2 * H:3 * H] + r * gh[:, 2 * H:3 * H])
        h_new = (1.0 - z) * n + z * h
        h_upd = m * h_new + (1.0 - m) * h
        return h_upd, m * h_upd

    _, outs = lax.scan(step, h0, (gi_all, ms))                           # (S, B, H)
    logits = (jnp.dot(outs.reshape(S * B, H).astype(jnp.bfloat16), w_cls,
                      preferred_element_type=jnp.float32) + b_cls).reshape(S, B, -1)
    return jnp.transpose(logits, (1, 0, 2))


# ----------------------------------------------------------------------------
# Deterministic parameter init (shapes implied by the module's __init__), fused gate layout
# ----------------------------------------------------------------------------
def init_params(key, D, H, C):
    ks = jax.random.split(key, 6)
    scale = 0.1
    return {
        # GRU (num_layers=1, unidirectional); stored transposed, gates fused column-wise (r, z, n)
        "w_ih": scale * jax.random.normal(ks[0], (D, 3 * H), jnp.float32),
        "w_hh": scale * jax.random.normal(ks[1], (H, 3 * H), jnp.float32),
        "b_ih": scale * jax.random.normal(ks[2], (1, 3 * H), jnp.float32),
        "b_hh": scale * jax.random.normal(ks[3], (1, 3 * H), jnp.float32),
        # token-classification head (transfered_model.model.classifier): Linear(H -> num_labels)
        "w_cls": scale * jax.random.normal(ks[4], (H, C), jnp.float32),
        "b_cls": scale * jax.random.normal(ks[5], (1, C), jnp.float32),
    }


if __name__ == "__main__":
    key = jax.random.PRNGKey(0)
    B, S, D, H, C, L = 8, 8, 32, 32, 4, 1   # D == H so the GRU->classifier chain is consistent

    k_x, k_h, k_p = jax.random.split(key, 3)
    x = jax.random.normal(k_x, (B, S, D), jnp.float32)            # bert hidden_states[0]
    h_stack = jax.random.normal(k_h, (L, B, S, D), jnp.float32)   # stack(bert hidden_states[1:])
    lengths = jnp.array([8, 5, 8, 3, 8, 6, 8, 4], jnp.int32)      # at least one full-length seq
    attn_mask = (jnp.arange(S)[None, :] < lengths[:, None]).astype(jnp.int32)   # (B, S)

    params = init_params(k_p, D, H, C)

    logits = transformer_rnn_forward(x, h_stack, attn_mask, params)
    logits = jax.block_until_ready(logits)
    assert logits.shape == (B, S, C), logits.shape

    ref = reference_forward(x, h_stack, attn_mask, params)
    assert jnp.allclose(logits, ref, rtol=1e-2, atol=1e-2), float(jnp.max(jnp.abs(logits - ref)))

    print("KERNEL_OK")
</pallas_src>

<mosaic_0001>
module attributes {stable_mosaic.version = 11 : i64} {
  func.func @_matmul_bias_kernel(%arg0: i32, %arg1: memref<64x32xbf16, #tpu.memory_space<vmem>>, %arg2: memref<32x96xbf16, #tpu.memory_space<vmem>>, %arg3: memref<1x96xf32, #tpu.memory_space<vmem>>, %arg4: memref<64x96xf32, #tpu.memory_space<vmem>>) attributes {dimension_semantics = [#tpu.dimension_semantics<parallel>], iteration_bounds = array<i64: 1>, scalar_prefetch = 0 : i64, scratch_operands = 0 : i64, tpu.core_type = #tpu.core_type<tc>, window_params = [{transform_indices = @transform_0, window_bounds = array<i64: 64, 32>}, {pipeline_mode = #tpu.pipeline_mode<synchronous>, transform_indices = @transform_1, window_bounds = array<i64: 32, 96>}, {pipeline_mode = #tpu.pipeline_mode<synchronous>, transform_indices = @transform_2, window_bounds = array<i64: 1, 96>}, {transform_indices = @transform_3, window_bounds = array<i64: 64, 96>}]} {
    %c0 = arith.constant 0 : index
    %c0_0 = arith.constant 0 : index
    %0 = vector.load %arg1[%c0, %c0_0] : memref<64x32xbf16, #tpu.memory_space<vmem>>, vector<64x32xbf16>
    %c0_1 = arith.constant 0 : index
    %c0_2 = arith.constant 0 : index
    %1 = vector.load %arg2[%c0_1, %c0_2] : memref<32x96xbf16, #tpu.memory_space<vmem>>, vector<32x96xbf16>
    %cst = arith.constant dense<0.000000e+00> : vector<64x96xf32>
    %2 = tpu.matmul %0, %1, %cst {dimension_numbers = #tpu.dot_dimension_numbers<[1], [0], [0], [1], [0, 0, 1, 1], [], []>} : vector<64x32xbf16>, vector<32x96xbf16>, vector<64x96xf32> -> vector<64x96xf32>
    %c0_3 = arith.constant 0 : index
    %c0_4 = arith.constant 0 : index
    %3 = vector.load %arg3[%c0_3, %c0_4] : memref<1x96xf32, #tpu.memory_space<vmem>>, vector<1x96xf32>
    %4 = vector.broadcast %3 : vector<1x96xf32> to vector<64x96xf32>
    %5 = arith.addf %2, %4 : vector<64x96xf32>
    %c0_5 = arith.constant 0 : index
    %c0_6 = arith.constant 0 : index
    %6 = vector.load %arg4[%c0_5, %c0_6] : memref<64x96xf32, #tpu.memory_space<vmem>>, vector<64x96xf32>
    tpu.vector_store %arg4[%c0_5, %c0_6], %5 {strides = array<i32>} : memref<64x96xf32, #tpu.memory_space<vmem>>, vector<64x96xf32>,
    return
  }
  func.func @transform_0(%arg0: i32) -> (i32, i32) {
    %c0_i32 = arith.constant 0 : i32
    %c0_i32_0 = arith.constant 0 : i32
    return %arg0, %c0_i32 : i32, i32
  }
  func.func @transform_1(%arg0: i32) -> (i32, i32) {
    %c0_i32 = arith.constant 0 : i32
    %c0_i32_0 = arith.constant 0 : i32
    %c0_i32_1 = arith.constant 0 : i32
    return %c0_i32, %c0_i32_0 : i32, i32
  }
  func.func @transform_2(%arg0: i32) -> (i32, i32) {
    %c0_i32 = arith.constant 0 : i32
    %c0_i32_0 = arith.constant 0 : i32
    %c0_i32_1 = arith.constant 0 : i32
    return %c0_i32, %c0_i32_0 : i32, i32
  }
  func.func @transform_3(%arg0: i32) -> (i32, i32) {
    %c0_i32 = arith.constant 0 : i32
    %c0_i32_0 = arith.constant 0 : i32
    return %arg0, %c0_i32 : i32, i32
  }
}

module attributes {stable_mosaic.version = 11 : i64} {
  func.func @_gru_recurrence_kernel(%arg0: i32, %arg1: i32, %arg2: memref<8x1xi32, #tpu.memory_space<vmem>>, %arg3: memref<8x8x96xf32, #tpu.memory_space<vmem>>, %arg4: memref<8x32xf32, #tpu.memory_space<vmem>>, %arg5: memref<32x96xbf16, #tpu.memory_space<vmem>>, %arg6: memref<1x96xf32, #tpu.memory_space<vmem>>, %arg7: memref<8x8x32xf32, #tpu.memory_space<vmem>>, %arg8: memref<8x32xf32, #tpu.memory_space<vmem>>) attributes {dimension_semantics = [#tpu.dimension_semantics<parallel>, #tpu.dimension_semantics<arbitrary>], iteration_bounds = array<i64: 1, 1>, scalar_prefetch = 0 : i64, scratch_operands = 1 : i64, tpu.core_type = #tpu.core_type<tc>, window_params = [{transform_indices = @transform_0, window_bounds = array<i64: 8, 1>}, {transform_indices = @transform_1, window_bounds = array<i64: 8, 8, 96>}, {transform_indices = @transform_2, window_bounds = array<i64: 8, 32>}, {pipeline_mode = #tpu.pipeline_mode<synchronous>, transform_indices = @transform_3, window_bounds = array<i64: 32, 96>}, {pipeline_mode = #tpu.pipeline_mode<synchronous>, transform_indices = @transform_4, window_bounds = array<i64: 1, 96>}, {transform_indices = @transform_5, window_bounds = array<i64: 8, 8, 32>}]} {
    %c0_i32 = arith.constant 0 : i32
    %0 = arith.cmpi eq, %arg1, %c0_i32 : i32
    %1 = arith.extui %0 : i1 to i32
    %c0_i32_0 = arith.constant 0 : i32
    %2 = arith.cmpi ne, %1, %c0_i32_0 : i32
    scf.if %2 {
      %c0_83 = arith.constant 0 : index
      %c0_84 = arith.constant 0 : index
      %417 = vector.load %arg4[%c0_83, %c0_84] : memref<8x32xf32, #tpu.memory_space<vmem>>, vector<8x32xf32>
      %c0_85 = arith.constant 0 : index
      %c0_86 = arith.constant 0 : index
      %418 = vector.load %arg8[%c0_85, %c0_86] : memref<8x32xf32, #tpu.memory_space<vmem>>, vector<8x32xf32>
      tpu.vector_store %arg8[%c0_85, %c0_86], %417 {strides = array<i32>} : memref<8x32xf32, #tpu.memory_space<vmem>>, vector<8x32xf32>,
    } else {
    }
    %c0 = arith.constant 0 : index
    %c0_1 = arith.constant 0 : index
    %3 = vector.load %arg2[%c0, %c0_1] : memref<8x1xi32, #tpu.memory_space<vmem>>, vector<8x1xi32>
    %c0_2 = arith.constant 0 : index
    %c0_3 = arith.constant 0 : index
    %4 = vector.load %arg5[%c0_2, %c0_3] : memref<32x96xbf16, #tpu.memory_space<vmem>>, vector<32x96xbf16>
    %c0_4 = arith.constant 0 : index
    %c0_5 = arith.constant 0 : index
    %5 = vector.load %arg6[%c0_4, %c0_5] : memref<1x96xf32, #tpu.memory_space<vmem>>, vector<1x96xf32>
    %c8_i32 = arith.constant 8 : i32
    %6 = arith.muli %arg1, %c8_i32 : i32
    %c0_6 = arith.constant 0 : index
    %c0_7 = arith.constant 0 : index
    %7 = vector.load %arg8[%c0_6, %c0_7] : memref<8x32xf32, #tpu.memory_space<vmem>>, vector<8x32xf32>
    %c0_i32_8 = arith.constant 0 : i32
    %8 = arith.index_cast %c0_i32_8 : i32 to index
    %c0_9 = arith.constant 0 : index
    %c0_10 = arith.constant 0 : index
    %9 = vector.load %arg3[%8, %c0_9, %c0_10] : memref<8x8x96xf32, #tpu.memory_space<vmem>>, vector<1x8x96xf32>
    %10 = vector.shape_cast %9 : vector<1x8x96xf32> to vector<8x96xf32>
    %11 = arith.truncf %7 : vector<8x32xf32> to vector<8x32xbf16>
    %cst = arith.constant dense<0.000000e+00> : vector<8x96xf32>
    %12 = tpu.matmul %11, %4, %cst {dimension_numbers = #tpu.dot_dimension_numbers<[1], [0], [0], [1], [0, 0, 1, 1], [], []>} : vector<8x32xbf16>, vector<32x96xbf16>, vector<8x96xf32> -> vector<8x96xf32>
    %13 = vector.broadcast %5 : vector<1x96xf32> to vector<8x96xf32>
    %14 = arith.addf %12, %13 : vector<8x96xf32>
    %15 = vector.extract_strided_slice %10 {offsets = [0, 0], sizes = [8, 32], strides = [1, 1]} : vector<8x96xf32> to vector<8x32xf32>
    %16 = vector.extract_strided_slice %14 {offsets = [0, 0], sizes = [8, 32], strides = [1, 1]} : vector<8x96xf32> to vector<8x32xf32>
    %17 = arith.addf %15, %16 : vector<8x32xf32>
    %18 = arith.negf %17 : vector<8x32xf32>
    %19 = math.exp %18 : vector<8x32xf32>
    %cst_11 = arith.constant 1.000000e+00 : f32
    %20 = vector.broadcast %cst_11 : f32 to vector<8x32xf32>
    %21 = arith.addf %20, %19 : vector<8x32xf32>
    %22 = arith.divf %20, %21 : vector<8x32xf32>
    %23 = vector.extract_strided_slice %10 {offsets = [0, 32], sizes = [8, 32], strides = [1, 1]} : vector<8x96xf32> to vector<8x32xf32>
    %24 = vector.extract_strided_slice %14 {offsets = [0, 32], sizes = [8, 32], strides = [1, 1]} : vector<8x96xf32> to vector<8x32xf32>
    %25 = arith.addf %23, %24 : vector<8x32xf32>
    %26 = arith.negf %25 : vector<8x32xf32>
    %27 = math.exp %26 : vector<8x32xf32>
    %cst_12 = arith.constant 1.000000e+00 : f32
    %28 = vector.broadcast %cst_12 : f32 to vector<8x32xf32>
    %29 = arith.addf %28, %27 : vector<8x32xf32>
    %30 = arith.divf %28, %29 : vector<8x32xf32>
    %31 = vector.extract_strided_slice %10 {offsets = [0, 64], sizes = [8, 32], strides = [1, 1]} : vector<8x96xf32> to vector<8x32xf32>
    %32 = vector.extract_strided_slice %14 {offsets = [0, 64], sizes = [8, 32], strides = [1, 1]} : vector<8x96xf32> to vector<8x32xf32>
    %33 = arith.mulf %22, %32 : vector<8x32xf32>
    %34 = arith.addf %31, %33 : vector<8x32xf32>
    %35 = math.tanh %34 : vector<8x32xf32>
    %cst_13 = arith.constant 1.000000e+00 : f32
    %36 = vector.broadcast %cst_13 : f32 to vector<8x32xf32>
    %37 = arith.subf %36, %30 : vector<8x32xf32>
    %38 = arith.mulf %37, %35 : vector<8x32xf32>
    %39 = arith.mulf %30, %7 : vector<8x32xf32>
    %40 = arith.addf %38, %39 : vector<8x32xf32>
    %41 = arith.addi %6, %c0_i32_8 : i32
    %42 = vector.broadcast %41 : i32 to vector<8x1xi32>
    %43 = arith.cmpi slt, %42, %3 : vector<8x1xi32>
    %44 = arith.extui %43 : vector<8x1xi1> to vector<8x1xi32>
    %45 = arith.sitofp %44 : vector<8x1xi32> to vector<8x1xf32>
    %46 = vector.broadcast %45 : vector<8x1xf32> to vector<8x32xf32>
    %47 = arith.mulf %46, %40 : vector<8x32xf32>
    %cst_14 = arith.constant 1.000000e+00 : f32
    %48 = vector.broadcast %cst_14 : f32 to vector<8x1xf32>
    %49 = arith.subf %48, %45 : vector<8x1xf32>
    %50 = vector.broadcast %49 : vector<8x1xf32> to vector<8x32xf32>
    %51 = arith.mulf %50, %7 : vector<8x32xf32>
    %52 = arith.addf %47, %51 : vector<8x32xf32>
    %53 = vector.broadcast %45 : vector<8x1xf32> to vector<8x32xf32>
    %54 = arith.mulf %53, %52 : vector<8x32xf32>
    %55 = arith.index_cast %c0_i32_8 : i32 to index
    %c0_15 = arith.constant 0 : index
    %c0_16 = arith.constant 0 : index
    %56 = vector.load %arg7[%55, %c0_15, %c0_16] : memref<8x8x32xf32, #tpu.memory_space<vmem>>, vector<1x8x32xf32>
    %57 = vector.shape_cast %56 : vector<1x8x32xf32> to vector<8x32xf32>
    %58 = vector.shape_cast %54 : vector<8x32xf32> to vector<1x8x32xf32>
    tpu.vector_store %arg7[%55, %c0_15, %c0_16], %58 {strides = array<i32>} : memref<8x8x32xf32, #tpu.memory_space<vmem>>, vector<1x8x32xf32>,
    %c1_i32 = arith.constant 1 : i32
    %59 = arith.index_cast %c1_i32 : i32 to index
    %c0_17 = arith.constant 0 : index
    %c0_18 = arith.constant 0 : index
    %60 = vector.load %arg3[%59, %c0_17, %c0_18] : memref<8x8x96xf32, #tpu.memory_space<vmem>>, vector<1x8x96xf32>
    %61 = vector.shape_cast %60 : vector<1x8x96xf32> to vector<8x96xf32>
    %62 = arith.truncf %52 : vector<8x32xf32> to vector<8x32xbf16>
    %cst_19 = arith.constant dense<0.000000e+00> : vector<8x96xf32>
    %63 = tpu.matmul %62, %4, %cst_19 {dimension_numbers = #tpu.dot_dimension_numbers<[1], [0], [0], [1], [0, 0, 1, 1], [], []>} : vector<8x32xbf16>, vector<32x96xbf16>, vector<8x96xf32> -> vector<8x96xf32>
    %64 = vector.broadcast %5 : vector<1x96xf32> to vector<8x96xf32>
    %65 = arith.addf %63, %64 : vector<8x96xf32>
    %66 = vector.extract_strided_slice %61 {offsets = [0, 0], sizes = [8, 32], strides = [1, 1]} : vector<8x96xf32> to vector<8x32xf32>
    %67 = vector.extract_strided_slice %65 {offsets = [0, 0], sizes = [8, 32], strides = [1, 1]} : vector<8x96xf32> to vector<8x32xf32>
    %68 = arith.addf %66, %67 : vector<8x32xf32>
    %69 = arith.negf %68 : vector<8x32xf32>
    %70 = math.exp %69 : vector<8x32xf32>
    %cst_20 = arith.constant 1.000000e+00 : f32
    %71 = vector.broadcast %cst_20 : f32 to vector<8x32xf32>
    %72 = arith.addf %71, %70 : vector<8x32xf32>
    %73 = arith.divf %71, %72 : vector<8x32xf32>
    %74 = vector.extract_strided_slice %61 {offsets = [0, 32], sizes = [8, 32], strides = [1, 1]} : vector<8x96xf32> to vector<8x32xf32>
    %75 = vector.extract_strided_slice %65 {offsets = [0, 32], sizes = [8, 32], strides = [1, 1]} : vector<8x96xf32> to vector<8x32xf32>
    %76 = arith.addf %74, %75 : vector<8x32xf32>
    %77 = arith.negf %76 : vector<8x32xf32>
    %78 = math.exp %77 : vector<8x32xf32>
    %cst_21 = arith.constant 1.000000e+00 : f32
    %79 = vector.broadcast %cst_21 : f32 to vector<8x32xf32>
    %80 = arith.addf %79, %78 : vector<8x32xf32>
    %81 = arith.divf %79, %80 : vector<8x32xf32>
    %82 = vector.extract_strided_slice %61 {offsets = [0, 64], sizes = [8, 32], strides = [1, 1]} : vector<8x96xf32> to vector<8x32xf32>
    %83 = vector.extract_strided_slice %65 {offsets = [0, 64], sizes = [8, 32], strides = [1, 1]} : vector<8x96xf32> to vector<8x32xf32>
    %84 = arith.mulf %73, %83 : vector<8x32xf32>
    %85 = arith.addf %82, %84 : vector<8x32xf32>
    %86 = math.tanh %85 : vector<8x32xf32>
    %cst_22 = arith.constant 1.000000e+00 : f32
    %87 = vector.broadcast %cst_22 : f32 to vector<8x32xf32>
    %88 = arith.subf %87, %81 : vector<8x32xf32>
    %89 = arith.mulf %88, %86 : vector<8x32xf32>
    %90 = arith.mulf %81, %52 : vector<8x32xf32>
    %91 = arith.addf %89, %90 : vector<8x32xf32>
    %92 = arith.addi %6, %c1_i32 : i32
    %93 = vector.broadcast %92 : i32 to vector<8x1xi32>
    %94 = arith.cmpi slt, %93, %3 : vector<8x1xi32>
    %95 = arith.extui %94 : vector<8x1xi1> to vector<8x1xi32>
    %96 = arith.sitofp %95 : vector<8x1xi32> to vector<8x1xf32>
    %97 = vector.broadcast %96 : vector<8x1xf32> to vector<8x32xf32>
    %98 = arith.mulf %97, %91 : vector<8x32xf32>
    %cst_23 = arith.constant 1.000000e+00 : f32
    %99 = vector.broadcast %cst_23 : f32 to vector<8x1xf32>
    %100 = arith.subf %99, %96 : vector<8x1xf32>
    %101 = vector.broadcast %100 : vector<8x1xf32> to vector<8x32xf32>
    %102 = arith.mulf %101, %52 : vector<8x32xf32>
    %103 = arith.addf %98, %102 : vector<8x32xf32>
    %104 = vector.broadcast %96 : vector<8x1xf32> to vector<8x32xf32>
    %105 = arith.mulf %104, %103 : vector<8x32xf32>
    %106 = arith.index_cast %c1_i32 : i32 to index
    %c0_24 = arith.constant 0 : index
    %c0_25 = arith.constant 0 : index
    %107 = vector.load %arg7[%106, %c0_24, %c0_25] : memref<8x8x32xf32, #tpu.memory_space<vmem>>, vector<1x8x32xf32>
    %108 = vector.shape_cast %107 : vector<1x8x32xf32> to vector<8x32xf32>
    %109 = vector.shape_cast %105 : vector<8x32xf32> to vector<1x8x32xf32>
    tpu.vector_store %arg7[%106, %c0_24, %c0_25], %109 {strides = array<i32>} : memref<8x8x32xf32, #tpu.memory_space<vmem>>, vector<1x8x32xf32>,
    %c2_i32 = arith.constant 2 : i32
    %110 = arith.index_cast %c2_i32 : i32 to index
    %c0_26 = arith.constant 0 : index
    %c0_27 = arith.constant 0 : index
    %111 = vector.load %arg3[%110, %c0_26, %c0_27] : memref<8x8x96xf32, #tpu.memory_space<vmem>>, vector<1x8x96xf32>
    %112 = vector.shape_cast %111 : vector<1x8x96xf32> to vector<8x96xf32>
    %113 = arith.truncf %103 : vector<8x32xf32> to vector<8x32xbf16>
    %cst_28 = arith.constant dense<0.000000e+00> : vector<8x96xf32>
    %114 = tpu.matmul %113, %4, %cst_28 {dimension_numbers = #tpu.dot_dimension_numbers<[1], [0], [0], [1], [0, 0, 1, 1], [], []>} : vector<8x32xbf16>, vector<32x96xbf16>, vector<8x96xf32> -> vector<8x96xf32>
    %115 = vector.broadcast %5 : vector<1x96xf32> to vector<8x96xf32>
    %116 = arith.addf %114, %115 : vector<8x96xf32>
    %117 = vector.extract_strided_slice %112 {offsets = [0, 0], sizes = [8, 32], strides = [1, 1]} : vector<8x96xf32> to vector<8x32xf32>
    %118 = vector.extract_strided_slice %116 {offsets = [0, 0], sizes = [8, 32], strides = [1, 1]} : vector<8x96xf32> to vector<8x32xf32>
    %119 = arith.addf %117, %118 : vector<8x32xf32>
    %120 = arith.negf %119 : vector<8x32xf32>
    %121 = math.exp %120 : vector<8x32xf32>
    %cst_29 = arith.constant 1.000000e+00 : f32
    %122 = vector.broadcast %cst_29 : f32 to vector<8x32xf32>
    %123 = arith.addf %122, %121 : vector<8x32xf32>
    %124 = arith.divf %122, %123 : vector<8x32xf32>
    %125 = vector.extract_strided_slice %112 {offsets = [0, 32], sizes = [8, 32], strides = [1, 1]} : vector<8x96xf32> to vector<8x32xf32>
    %126 = vector.extract_strided_slice %116 {offsets = [0, 32], sizes = [8, 32], strides = [1, 1]} : vector<8x96xf32> to vector<8x32xf32>
    %127 = arith.addf %125, %126 : vector<8x32xf32>
    %128 = arith.negf %127 : vector<8x32xf32>
    %129 = math.exp %128 : vector<8x32xf32>
    %cst_30 = arith.constant 1.000000e+00 : f32
    %130 = vector.broadcast %cst_30 : f32 to vector<8x32xf32>
    %131 = arith.addf %130, %129 : vector<8x32xf32>
    %132 = arith.divf %130, %131 : vector<8x32xf32>
    %133 = vector.extract_strided_slice %112 {offsets = [0, 64], sizes = [8, 32], strides = [1, 1]} : vector<8x96xf32> to vector<8x32xf32>
    %134 = vector.extract_strided_slice %116 {offsets = [0, 64], sizes = [8, 32], strides = [1, 1]} : vector<8x96xf32> to vector<8x32xf32>
    %135 = arith.mulf %124, %134 : vector<8x32xf32>
    %136 = arith.addf %133, %135 : vector<8x32xf32>
    %137 = math.tanh %136 : vector<8x32xf32>
    %cst_31 = arith.constant 1.000000e+00 : f32
    %138 = vector.broadcast %cst_31 : f32 to vector<8x32xf32>
    %139 = arith.subf %138, %132 : vector<8x32xf32>
    %140 = arith.mulf %139, %137 : vector<8x32xf32>
    %141 = arith.mulf %132, %103 : vector<8x32xf32>
    %142 = arith.addf %140, %141 : vector<8x32xf32>
    %143 = arith.addi %6, %c2_i32 : i32
    %144 = vector.broadcast %143 : i32 to vector<8x1xi32>
    %145 = arith.cmpi slt, %144, %3 : vector<8x1xi32>
    %146 = arith.extui %145 : vector<8x1xi1> to vector<8x1xi32>
    %147 = arith.sitofp %146 : vector<8x1xi32> to vector<8x1xf32>
    %148 = vector.broadcast %147 : vector<8x1xf32> to vector<8x32xf32>
    %149 = arith.mulf %148, %142 : vector<8x32xf32>
    %cst_32 = arith.constant 1.000000e+00 : f32
    %150 = vector.broadcast %cst_32 : f32 to vector<8x1xf32>
    %151 = arith.subf %150, %147 : vector<8x1xf32>
    %152 = vector.broadcast %151 : vector<8x1xf32> to vector<8x32xf32>
    %153 = arith.mulf %152, %103 : vector<8x32xf32>
    %154 = arith.addf %149, %153 : vector<8x32xf32>
    %155 = vector.broadcast %147 : vector<8x1xf32> to vector<8x32xf32>
    %156 = arith.mulf %155, %154 : vector<8x32xf32>
    %157 = arith.index_cast %c2_i32 : i32 to index
    %c0_33 = arith.constant 0 : index
    %c0_34 = arith.constant 0 : index
    %158 = vector.load %arg7[%157, %c0_33, %c0_34] : memref<8x8x32xf32, #tpu.memory_space<vmem>>, vector<1x8x32xf32>
    %159 = vector.shape_cast %158 : vector<1x8x32xf32> to vector<8x32xf32>
    %160 = vector.shape_cast %156 : vector<8x32xf32> to vector<1x8x32xf32>
    tpu.vector_store %arg7[%157, %c0_33, %c0_34], %160 {strides = array<i32>} : memref<8x8x32xf32, #tpu.memory_space<vmem>>, vector<1x8x32xf32>,
    %c3_i32 = arith.constant 3 : i32
    %161 = arith.index_cast %c3_i32 : i32 to index
    %c0_35 = arith.constant 0 : index
    %c0_36 = arith.constant 0 : index
    %162 = vector.load %arg3[%161, %c0_35, %c0_36] : memref<8x8x96xf32, #tpu.memory_space<vmem>>, vector<1x8x96xf32>
    %163 = vector.shape_cast %162 : vector<1x8x96xf32> to vector<8x96xf32>
    %164 = arith.truncf %154 : vector<8x32xf32> to vector<8x32xbf16>
    %cst_37 = arith.constant dense<0.000000e+00> : vector<8x96xf32>
    %165 = tpu.matmul %164, %4, %cst_37 {dimension_numbers = #tpu.dot_dimension_numbers<[1], [0], [0], [1], [0, 0, 1, 1], [], []>} : vector<8x32xbf16>, vector<32x96xbf16>, vector<8x96xf32> -> vector<8x96xf32>
    %166 = vector.broadcast %5 : vector<1x96xf32> to vector<8x96xf32>
    %167 = arith.addf %165, %166 : vector<8x96xf32>
    %168 = vector.extract_strided_slice %163 {offsets = [0, 0], sizes = [8, 32], strides = [1, 1]} : vector<8x96xf32> to vector<8x32xf32>
    %169 = vector.extract_strided_slice %167 {offsets = [0, 0], sizes = [8, 32], strides = [1, 1]} : vector<8x96xf32> to vector<8x32xf32>
    %170 = arith.addf %168, %169 : vector<8x32xf32>
    %171 = arith.negf %170 : vector<8x32xf32>
    %172 = math.exp %171 : vector<8x32xf32>
    %cst_38 = arith.constant 1.000000e+00 : f32
    %173 = vector.broadcast %cst_38 : f32 to vector<8x32xf32>
    %174 = arith.addf %173, %172 : vector<8x32xf32>
    %175 = arith.divf %173, %174 : vector<8x32xf32>
    %176 = vector.extract_strided_slice %163 {offsets = [0, 32], sizes = [8, 32], strides = [1, 1]} : vector<8x96xf32> to vector<8x32xf32>
    %177 = vector.extract_strided_slice %167 {offsets = [0, 32], sizes = [8, 32], strides = [1, 1]} : vector<8x96xf32> to vector<8x32xf32>
    %178 = arith.addf %176, %177 : vector<8x32xf32>
    %179 = arith.negf %178 : vector<8x32xf32>
    %180 = math.exp %179 : vector<8x32xf32>
    %cst_39 = arith.constant 1.000000e+00 : f32
    %181 = vector.broadcast %cst_39 : f32 to vector<8x32xf32>
    %182 = arith.addf %181, %180 : vector<8x32xf32>
    %183 = arith.divf %181, %182 : vector<8x32xf32>
    %184 = vector.extract_strided_slice %163 {offsets = [0, 64], sizes = [8, 32], strides = [1, 1]} : vector<8x96xf32> to vector<8x32xf32>
    %185 = vector.extract_strided_slice %167 {offsets = [0, 64], sizes = [8, 32], strides = [1, 1]} : vector<8x96xf32> to vector<8x32xf32>
    %186 = arith.mulf %175, %185 : vector<8x32xf32>
    %187 = arith.addf %184, %186 : vector<8x32xf32>
    %188 = math.tanh %187 : vector<8x32xf32>
    %cst_40 = arith.constant 1.000000e+00 : f32
    %189 = vector.broadcast %cst_40 : f32 to vector<8x32xf32>
    %190 = arith.subf %189, %183 : vector<8x32xf32>
    %191 = arith.mulf %190, %188 : vector<8x32xf32>
    %192 = arith.mulf %183, %154 : vector<8x32xf32>
    %193 = arith.addf %191, %192 : vector<8x32xf32>
    %194 = arith.addi %6, %c3_i32 : i32
    %195 = vector.broadcast %194 : i32 to vector<8x1xi32>
    %196 = arith.cmpi slt, %195, %3 : vector<8x1xi32>
    %197 = arith.extui %196 : vector<8x1xi1> to vector<8x1xi32>
    %198 = arith.sitofp %197 : vector<8x1xi32> to vector<8x1xf32>
    %199 = vector.broadcast %198 : vector<8x1xf32> to vector<8x32xf32>
    %200 = arith.mulf %199, %193 : vector<8x32xf32>
    %cst_41 = arith.constant 1.000000e+00 : f32
    %201 = vector.broadcast %cst_41 : f32 to vector<8x1xf32>
    %202 = arith.subf %201, %198 : vector<8x1xf32>
    %203 = vector.broadcast %202 : vector<8x1xf32> to vector<8x32xf32>
    %204 = arith.mulf %203, %154 : vector<8x32xf32>
    %205 = arith.addf %200, %204 : vector<8x32xf32>
    %206 = vector.broadcast %198 : vector<8x1xf32> to vector<8x32xf32>
    %207 = arith.mulf %206, %205 : vector<8x32xf32>
    %208 = arith.index_cast %c3_i32 : i32 to index
    %c0_42 = arith.constant 0 : index
    %c0_43 = arith.constant 0 : index
    %209 = vector.load %arg7[%208, %c0_42, %c0_43] : memref<8x8x32xf32, #tpu.memory_space<vmem>>, vector<1x8x32xf32>
    %210 = vector.shape_cast %209 : vector<1x8x32xf32> to vector<8x32xf32>
    %211 = vector.shape_cast %207 : vector<8x32xf32> to vector<1x8x32xf32>
    tpu.vector_store %arg7[%208, %c0_42, %c0_43], %211 {strides = array<i32>} : memref<8x8x32xf32, #tpu.memory_space<vmem>>, vector<1x8x32xf32>,
    %c4_i32 = arith.constant 4 : i32
    %212 = arith.index_cast %c4_i32 : i32 to index
    %c0_44 = arith.constant 0 : index
    %c0_45 = arith.constant 0 : index
    %213 = vector.load %arg3[%212, %c0_44, %c0_45] : memref<8x8x96xf32, #tpu.memory_space<vmem>>, vector<1x8x96xf32>
    %214 = vector.shape_cast %213 : vector<1x8x96xf32> to vector<8x96xf32>
    %215 = arith.truncf %205 : vector<8x32xf32> to vector<8x32xbf16>
    %cst_46 = arith.constant dense<0.000000e+00> : vector<8x96xf32>
    %216 = tpu.matmul %215, %4, %cst_46 {dimension_numbers = #tpu.dot_dimension_numbers<[1], [0], [0], [1], [0, 0, 1, 1], [], []>} : vector<8x32xbf16>, vector<32x96xbf16>, vector<8x96xf32> -> vector<8x96xf32>
    %217 = vector.broadcast %5 : vector<1x96xf32> to vector<8x96xf32>
    %218 = arith.addf %216, %217 : vector<8x96xf32>
    %219 = vector.extract_strided_slice %214 {offsets = [0, 0], sizes = [8, 32], strides = [1, 1]} : vector<8x96xf32> to vector<8x32xf32>
    %220 = vector.extract_strided_slice %218 {offsets = [0, 0], sizes = [8, 32], strides = [1, 1]} : vector<8x96xf32> to vector<8x32xf32>
    %221 = arith.addf %219, %220 : vector<8x32xf32>
    %222 = arith.negf %221 : vector<8x32xf32>
    %223 = math.exp %222 : vector<8x32xf32>
    %cst_47 = arith.constant 1.000000e+00 : f32
    %224 = vector.broadcast %cst_47 : f32 to vector<8x32xf32>
    %225 = arith.addf %224, %223 : vector<8x32xf32>
    %226 = arith.divf %224, %225 : vector<8x32xf32>
    %227 = vector.extract_strided_slice %214 {offsets = [0, 32], sizes = [8, 32], strides = [1, 1]} : vector<8x96xf32> to vector<8x32xf32>
    %228 = vector.extract_strided_slice %218 {offsets = [0, 32], sizes = [8, 32], strides = [1, 1]} : vector<8x96xf32> to vector<8x32xf32>
    %229 = arith.addf %227, %228 : vector<8x32xf32>
    %230 = arith.negf %229 : vector<8x32xf32>
    %231 = math.exp %230 : vector<8x32xf32>
    %cst_48 = arith.constant 1.000000e+00 : f32
    %232 = vector.broadcast %cst_48 : f32 to vector<8x32xf32>
    %233 = arith.addf %232, %231 : vector<8x32xf32>
    %234 = arith.divf %232, %233 : vector<8x32xf32>
    %235 = vector.extract_strided_slice %214 {offsets = [0, 64], sizes = [8, 32], strides = [1, 1]} : vector<8x96xf32> to vector<8x32xf32>
    %236 = vector.extract_strided_slice %218 {offsets = [0, 64], sizes = [8, 32], strides = [1, 1]} : vector<8x96xf32> to vector<8x32xf32>
    %237 = arith.mulf %226, %236 : vector<8x32xf32>
    %238 = arith.addf %235, %237 : vector<8x32xf32>
    %239 = math.tanh %238 : vector<8x32xf32>
    %cst_49 = arith.constant 1.000000e+00 : f32
    %240 = vector.broadcast %cst_49 : f32 to vector<8x32xf32>
    %241 = arith.subf %240, %234 : vector<8x32xf32>
    %242 = arith.mulf %241, %239 : vector<8x32xf32>
    %243 = arith.mulf %234, %205 : vector<8x32xf32>
    %244 = arith.addf %242, %243 : vector<8x32xf32>
    %245 = arith.addi %6, %c4_i32 : i32
    %246 = vector.broadcast %245 : i32 to vector<8x1xi32>
    %247 = arith.cmpi slt, %246, %3 : vector<8x1xi32>
    %248 = arith.extui %247 : vector<8x1xi1> to vector<8x1xi32>
    %249 = arith.sitofp %248 : vector<8x1xi32> to vector<8x1xf32>
    %250 = vector.broadcast %249 : vector<8x1xf32> to vector<8x32xf32>
    %251 = arith.mulf %250, %244 : vector<8x32xf32>
    %cst_50 = arith.constant 1.000000e+00 : f32
    %252 = vector.broadcast %cst_50 : f32 to vector<8x1xf32>
    %253 = arith.subf %252, %249 : vector<8x1xf32>
    %254 = vector.broadcast %253 : vector<8x1xf32> to vector<8x32xf32>
    %255 = arith.mulf %254, %205 : vector<8x32xf32>
    %256 = arith.addf %251, %255 : vector<8x32xf32>
    %257 = vector.broadcast %249 : vector<8x1xf32> to vector<8x32xf32>
    %258 = arith.mulf %257, %256 : vector<8x32xf32>
    %259 = arith.index_cast %c4_i32 : i32 to index
    %c0_51 = arith.constant 0 : index
    %c0_52 = arith.constant 0 : index
    %260 = vector.load %arg7[%259, %c0_51, %c0_52] : memref<8x8x32xf32, #tpu.memory_space<vmem>>, vector<1x8x32xf32>
    %261 = vector.shape_cast %260 : vector<1x8x32xf32> to vector<8x32xf32>
    %262 = vector.shape_cast %258 : vector<8x32xf32> to vector<1x8x32xf32>
    tpu.vector_store %arg7[%259, %c0_51, %c0_52], %262 {strides = array<i32>} : memref<8x8x32xf32, #tpu.memory_space<vmem>>, vector<1x8x32xf32>,
    %c5_i32 = arith.constant 5 : i32
    %263 = arith.index_cast %c5_i32 : i32 to index
    %c0_53 = arith.constant 0 : index
    %c0_54 = arith.constant 0 : index
    %264 = vector.load %arg3[%263, %c0_53, %c0_54] : memref<8x8x96xf32, #tpu.memory_space<vmem>>, vector<1x8x96xf32>
    %265 = vector.shape_cast %264 : vector<1x8x96xf32> to vector<8x96xf32>
    %266 = arith.truncf %256 : vector<8x32xf32> to vector<8x32xbf16>
    %cst_55 = arith.constant dense<0.000000e+00> : vector<8x96xf32>
    %267 = tpu.matmul %266, %4, %cst_55 {dimension_numbers = #tpu.dot_dimension_numbers<[1], [0], [0], [1], [0, 0, 1, 1], [], []>} : vector<8x32xbf16>, vector<32x96xbf16>, vector<8x96xf32> -> vector<8x96xf32>
    %268 = vector.broadcast %5 : vector<1x96xf32> to vector<8x96xf32>
    %269 = arith.addf %267, %268 : vector<8x96xf32>
    %270 = vector.extract_strided_slice %265 {offsets = [0, 0], sizes = [8, 32], strides = [1, 1]} : vector<8x96xf32> to vector<8x32xf32>
    %271 = vector.extract_strided_slice %269 {offsets = [0, 0], sizes = [8, 32], strides = [1, 1]} : vector<8x96xf32> to vector<8x32xf32>
    %272 = arith.addf %270, %271 : vector<8x32xf32>
    %273 = arith.negf %272 : vector<8x32xf32>
    %274 = math.exp %273 : vector<8x32xf32>
    %cst_56 = arith.constant 1.000000e+00 : f32
    %275 = vector.broadcast %cst_56 : f32 to vector<8x32xf32>
    %276 = arith.addf %275, %274 : vector<8x32xf32>
    %277 = arith.divf %275, %276 : vector<8x32xf32>
    %278 = vector.extract_strided_slice %265 {offsets = [0, 32], sizes = [8, 32], strides = [1, 1]} : vector<8x96xf32> to vector<8x32xf32>
    %279 = vector.extract_strided_slice %269 {offsets = [0, 32], sizes = [8, 32], strides = [1, 1]} : vector<8x96xf32> to vector<8x32xf32>
    %280 = arith.addf %278, %279 : vector<8x32xf32>
    %281 = arith.negf %280 : vector<8x32xf32>
    %282 = math.exp %281 : vector<8x32xf32>
    %cst_57 = arith.constant 1.000000e+00 : f32
    %283 = vector.broadcast %cst_57 : f32 to vector<8x32xf32>
    %284 = arith.addf %283, %282 : vector<8x32xf32>
    %285 = arith.divf %283, %284 : vector<8x32xf32>
    %286 = vector.extract_strided_slice %265 {offsets = [0, 64], sizes = [8, 32], strides = [1, 1]} : vector<8x96xf32> to vector<8x32xf32>
    %287 = vector.extract_strided_slice %269 {offsets = [0, 64], sizes = [8, 32], strides = [1, 1]} : vector<8x96xf32> to vector<8x32xf32>
    %288 = arith.mulf %277, %287 : vector<8x32xf32>
    %289 = arith.addf %286, %288 : vector<8x32xf32>
    %290 = math.tanh %289 : vector<8x32xf32>
    %cst_58 = arith.constant 1.000000e+00 : f32
    %291 = vector.broadcast %cst_58 : f32 to vector<8x32xf32>
    %292 = arith.subf %291, %285 : vector<8x32xf32>
    %293 = arith.mulf %292, %290 : vector<8x32xf32>
    %294 = arith.mulf %285, %256 : vector<8x32xf32>
    %295 = arith.addf %293, %294 : vector<8x32xf32>
    %296 = arith.addi %6, %c5_i32 : i32
    %297 = vector.broadcast %296 : i32 to vector<8x1xi32>
    %298 = arith.cmpi slt, %297, %3 : vector<8x1xi32>
    %299 = arith.extui %298 : vector<8x1xi1> to vector<8x1xi32>
    %300 = arith.sitofp %299 : vector<8x1xi32> to vector<8x1xf32>
    %301 = vector.broadcast %300 : vector<8x1xf32> to vector<8x32xf32>
    %302 = arith.mulf %301, %295 : vector<8x32xf32>
    %cst_59 = arith.constant 1.000000e+00 : f32
    %303 = vector.broadcast %cst_59 : f32 to vector<8x1xf32>
    %304 = arith.subf %303, %300 : vector<8x1xf32>
    %305 = vector.broadcast %304 : vector<8x1xf32> to vector<8x32xf32>
    %306 = arith.mulf %305, %256 : vector<8x32xf32>
    %307 = arith.addf %302, %306 : vector<8x32xf32>
    %308 = vector.broadcast %300 : vector<8x1xf32> to vector<8x32xf32>
    %309 = arith.mulf %308, %307 : vector<8x32xf32>
    %310 = arith.index_cast %c5_i32 : i32 to index
    %c0_60 = arith.constant 0 : index
    %c0_61 = arith.constant 0 : index
    %311 = vector.load %arg7[%310, %c0_60, %c0_61] : memref<8x8x32xf32, #tpu.memory_space<vmem>>, vector<1x8x32xf32>
    %312 = vector.shape_cast %311 : vector<1x8x32xf32> to vector<8x32xf32>
    %313 = vector.shape_cast %309 : vector<8x32xf32> to vector<1x8x32xf32>
    tpu.vector_store %arg7[%310, %c0_60, %c0_61], %313 {strides = array<i32>} : memref<8x8x32xf32, #tpu.memory_space<vmem>>, vector<1x8x32xf32>,
    %c6_i32 = arith.constant 6 : i32
    %314 = arith.index_cast %c6_i32 : i32 to index
    %c0_62 = arith.constant 0 : index
    %c0_63 = arith.constant 0 : index
    %315 = vector.load %arg3[%314, %c0_62, %c0_63] : memref<8x8x96xf32, #tpu.memory_space<vmem>>, vector<1x8x96xf32>
    %316 = vector.shape_cast %315 : vector<1x8x96xf32> to vector<8x96xf32>
    %317 = arith.truncf %307 : vector<8x32xf32> to vector<8x32xbf16>
    %cst_64 = arith.constant dense<0.000000e+00> : vector<8x96xf32>
    %318 = tpu.matmul %317, %4, %cst_64 {dimension_numbers = #tpu.dot_dimension_numbers<[1], [0], [0], [1], [0, 0, 1, 1], [], []>} : vector<8x32xbf16>, vector<32x96xbf16>, vector<8x96xf32> -> vector<8x96xf32>
    %319 = vector.broadcast %5 : vector<1x96xf32> to vector<8x96xf32>
    %320 = arith.addf %318, %319 : vector<8x96xf32>
    %321 = vector.extract_strided_slice %316 {offsets = [0, 0], sizes = [8, 32], strides = [1, 1]} : vector<8x96xf32> to vector<8x32xf32>
    %322 = vector.extract_strided_slice %320 {offsets = [0, 0], sizes = [8, 32], strides = [1, 1]} : vector<8x96xf32> to vector<8x32xf32>
    %323 = arith.addf %321, %322 : vector<8x32xf32>
    %324 = arith.negf %323 : vector<8x32xf32>
    %325 = math.exp %324 : vector<8x32xf32>
    %cst_65 = arith.constant 1.000000e+00 : f32
    %326 = vector.broadcast %cst_65 : f32 to vector<8x32xf32>
    %327 = arith.addf %326, %325 : vector<8x32xf32>
    %328 = arith.divf %326, %327 : vector<8x32xf32>
    %329 = vector.extract_strided_slice %316 {offsets = [0, 32], sizes = [8, 32], strides = [1, 1]} : vector<8x96xf32> to vector<8x32xf32>
    %330 = vector.extract_strided_slice %320 {offsets = [0, 32], sizes = [8, 32], strides = [1, 1]} : vector<8x96xf32> to vector<8x32xf32>
    %331 = arith.addf %329, %330 : vector<8x32xf32>
    %332 = arith.negf %331 : vector<8x32xf32>
    %333 = math.exp %332 : vector<8x32xf32>
    %cst_66 = arith.constant 1.000000e+00 : f32
    %334 = vector.broadcast %cst_66 : f32 to vector<8x32xf32>
    %335 = arith.addf %334, %333 : vector<8x32xf32>
    %336 = arith.divf %334, %335 : vector<8x32xf32>
    %337 = vector.extract_strided_slice %316 {offsets = [0, 64], sizes = [8, 32], strides = [1, 1]} : vector<8x96xf32> to vector<8x32xf32>
    %338 = vector.extract_strided_slice %320 {offsets = [0, 64], sizes = [8, 32], strides = [1, 1]} : vector<8x96xf32> to vector<8x32xf32>
    %339 = arith.mulf %328, %338 : vector<8x32xf32>
    %340 = arith.addf %337, %339 : vector<8x32xf32>
    %341 = math.tanh %340 : vector<8x32xf32>
    %cst_67 = arith.constant 1.000000e+00 : f32
    %342 = vector.broadcast %cst_67 : f32 to vector<8x32xf32>
    %343 = arith.subf %342, %336 : vector<8x32xf32>
    %344 = arith.mulf %343, %341 : vector<8x32xf32>
    %345 = arith.mulf %336, %307 : vector<8x32xf32>
    %346 = arith.addf %344, %345 : vector<8x32xf32>
    %347 = arith.addi %6, %c6_i32 : i32
    %348 = vector.broadcast %347 : i32 to vector<8x1xi32>
    %349 = arith.cmpi slt, %348, %3 : vector<8x1xi32>
    %350 = arith.extui %349 : vector<8x1xi1> to vector<8x1xi32>
    %351 = arith.sitofp %350 : vector<8x1xi32> to vector<8x1xf32>
    %352 = vector.broadcast %351 : vector<8x1xf32> to vector<8x32xf32>
    %353 = arith.mulf %352, %346 : vector<8x32xf32>
    %cst_68 = arith.constant 1.000000e+00 : f32
    %354 = vector.broadcast %cst_68 : f32 to vector<8x1xf32>
    %355 = arith.subf %354, %351 : vector<8x1xf32>
    %356 = vector.broadcast %355 : vector<8x1xf32> to vector<8x32xf32>
    %357 = arith.mulf %356, %307 : vector<8x32xf32>
    %358 = arith.addf %353, %357 : vector<8x32xf32>
    %359 = vector.broadcast %351 : vector<8x1xf32> to vector<8x32xf32>
    %360 = arith.mulf %359, %358 : vector<8x32xf32>
    %361 = arith.index_cast %c6_i32 : i32 to index
    %c0_69 = arith.constant 0 : index
    %c0_70 = arith.constant 0 : index
    %362 = vector.load %arg7[%361, %c0_69, %c0_70] : memref<8x8x32xf32, #tpu.memory_space<vmem>>, vector<1x8x32xf32>
    %363 = vector.shape_cast %362 : vector<1x8x32xf32> to vector<8x32xf32>
    %364 = vector.shape_cast %360 : vector<8x32xf32> to vector<1x8x32xf32>
    tpu.vector_store %arg7[%361, %c0_69, %c0_70], %364 {strides = array<i32>} : memref<8x8x32xf32, #tpu.memory_space<vmem>>, vector<1x8x32xf32>,
    %c7_i32 = arith.constant 7 : i32
    %365 = arith.index_cast %c7_i32 : i32 to index
    %c0_71 = arith.constant 0 : index
    %c0_72 = arith.constant 0 : index
    %366 = vector.load %arg3[%365, %c0_71, %c0_72] : memref<8x8x96xf32, #tpu.memory_space<vmem>>, vector<1x8x96xf32>
    %367 = vector.shape_cast %366 : vector<1x8x96xf32> to vector<8x96xf32>
    %368 = arith.truncf %358 : vector<8x32xf32> to vector<8x32xbf16>
    %cst_73 = arith.constant dense<0.000000e+00> : vector<8x96xf32>
    %369 = tpu.matmul %368, %4, %cst_73 {dimension_numbers = #tpu.dot_dimension_numbers<[1], [0], [0], [1], [0, 0, 1, 1], [], []>} : vector<8x32xbf16>, vector<32x96xbf16>, vector<8x96xf32> -> vector<8x96xf32>
    %370 = vector.broadcast %5 : vector<1x96xf32> to vector<8x96xf32>
    %371 = arith.addf %369, %370 : vector<8x96xf32>
    %372 = vector.extract_strided_slice %367 {offsets = [0, 0], sizes = [8, 32], strides = [1, 1]} : vector<8x96xf32> to vector<8x32xf32>
    %373 = vector.extract_strided_slice %371 {offsets = [0, 0], sizes = [8, 32], strides = [1, 1]} : vector<8x96xf32> to vector<8x32xf32>
    %374 = arith.addf %372, %373 : vector<8x32xf32>
    %375 = arith.negf %374 : vector<8x32xf32>
    %376 = math.exp %375 : vector<8x32xf32>
    %cst_74 = arith.constant 1.000000e+00 : f32
    %377 = vector.broadcast %cst_74 : f32 to vector<8x32xf32>
    %378 = arith.addf %377, %376 : vector<8x32xf32>
    %379 = arith.divf %377, %378 : vector<8x32xf32>
    %380 = vector.extract_strided_slice %367 {offsets = [0, 32], sizes = [8, 32], strides = [1, 1]} : vector<8x96xf32> to vector<8x32xf32>
    %381 = vector.extract_strided_slice %371 {offsets = [0, 32], sizes = [8, 32], strides = [1, 1]} : vector<8x96xf32> to vector<8x32xf32>
    %382 = arith.addf %380, %381 : vector<8x32xf32>
    %383 = arith.negf %382 : vector<8x32xf32>
    %384 = math.exp %383 : vector<8x32xf32>
    %cst_75 = arith.constant 1.000000e+00 : f32
    %385 = vector.broadcast %cst_75 : f32 to vector<8x32xf32>
    %386 = arith.addf %385, %384 : vector<8x32xf32>
    %387 = arith.divf %385, %386 : vector<8x32xf32>
    %388 = vector.extract_strided_slice %367 {offsets = [0, 64], sizes = [8, 32], strides = [1, 1]} : vector<8x96xf32> to vector<8x32xf32>
    %389 = vector.extract_strided_slice %371 {offsets = [0, 64], sizes = [8, 32], strides = [1, 1]} : vector<8x96xf32> to vector<8x32xf32>
    %390 = arith.mulf %379, %389 : vector<8x32xf32>
    %391 = arith.addf %388, %390 : vector<8x32xf32>
    %392 = math.tanh %391 : vector<8x32xf32>
    %cst_76 = arith.constant 1.000000e+00 : f32
    %393 = vector.broadcast %cst_76 : f32 to vector<8x32xf32>
    %394 = arith.subf %393, %387 : vector<8x32xf32>
    %395 = arith.mulf %394, %392 : vector<8x32xf32>
    %396 = arith.mulf %387, %358 : vector<8x32xf32>
    %397 = arith.addf %395, %396 : vector<8x32xf32>
    %398 = arith.addi %6, %c7_i32 : i32
    %399 = vector.broadcast %398 : i32 to vector<8x1xi32>
    %400 = arith.cmpi slt, %399, %3 : vector<8x1xi32>
    %401 = arith.extui %400 : vector<8x1xi1> to vector<8x1xi32>
    %402 = arith.sitofp %401 : vector<8x1xi32> to vector<8x1xf32>
    %403 = vector.broadcast %402 : vector<8x1xf32> to vector<8x32xf32>
    %404 = arith.mulf %403, %397 : vector<8x32xf32>
    %cst_77 = arith.constant 1.000000e+00 : f32
    %405 = vector.broadcast %cst_77 : f32 to vector<8x1xf32>
    %406 = arith.subf %405, %402 : vector<8x1xf32>
    %407 = vector.broadcast %406 : vector<8x1xf32> to vector<8x32xf32>
    %408 = arith.mulf %407, %358 : vector<8x32xf32>
    %409 = arith.addf %404, %408 : vector<8x32xf32>
    %410 = vector.broadcast %402 : vector<8x1xf32> to vector<8x32xf32>
    %411 = arith.mulf %410, %409 : vector<8x32xf32>
    %412 = arith.index_cast %c7_i32 : i32 to index
    %c0_78 = arith.constant 0 : index
    %c0_79 = arith.constant 0 : index
    %413 = vector.load %arg7[%412, %c0_78, %c0_79] : memref<8x8x32xf32, #tpu.memory_space<vmem>>, vector<1x8x32xf32>
    %414 = vector.shape_cast %413 : vector<1x8x32xf32> to vector<8x32xf32>
    %415 = vector.shape_cast %411 : vector<8x32xf32> to vector<1x8x32xf32>
    tpu.vector_store %arg7[%412, %c0_78, %c0_79], %415 {strides = array<i32>} : memref<8x8x32xf32, #tpu.memory_space<vmem>>, vector<1x8x32xf32>,
    %c8_i32_80 = arith.constant 8 : i32
    %c0_81 = arith.constant 0 : index
    %c0_82 = arith.constant 0 : index
    %416 = vector.load %arg8[%c0_81, %c0_82] : memref<8x32xf32, #tpu.memory_space<vmem>>, vector<8x32xf32>
    tpu.vector_store %arg8[%c0_81, %c0_82], %409 {strides = array<i32>} : memref<8x32xf32, #tpu.memory_space<vmem>>, vector<8x32xf32>,
    return
  }
  func.func @transform_0(%arg0: i32, %arg1: i32) -> (i32, i32) {
    %c0_i32 = arith.constant 0 : i32
    %c0_i32_0 = arith.constant 0 : i32
    return %arg0, %c0_i32 : i32, i32
  }
  func.func @transform_1(%arg0: i32, %arg1: i32) -> (i32, i32, i32) {
    %c0_i32 = arith.constant 0 : i32
    %c0_i32_0 = arith.constant 0 : i32
    return %arg1, %arg0, %c0_i32 : i32, i32, i32
  }
  func.func @transform_2(%arg0: i32, %arg1: i32) -> (i32, i32) {
    %c0_i32 = arith.constant 0 : i32
    %c0_i32_0 = arith.constant 0 : i32
    return %arg0, %c0_i32 : i32, i32
  }
  func.func @transform_3(%arg0: i32, %arg1: i32) -> (i32, i32) {
    %c0_i32 = arith.constant 0 : i32
    %c0_i32_0 = arith.constant 0 : i32
    %c0_i32_1 = arith.constant 0 : i32
    return %c0_i32, %c0_i32_0 : i32, i32
  }
  func.func @transform_4(%arg0: i32, %arg1: i32) -> (i32, i32) {
    %c0_i32 = arith.constant 0 : i32
    %c0_i32_0 = arith.constant 0 : i32
    %c0_i32_1 = arith.constant 0 : i32
    return %c0_i32, %c0_i32_0 : i32, i32
  }
  func.func @transform_5(%arg0: i32, %arg1: i32) -> (i32, i32, i32) {
    %c0_i32 = arith.constant 0 : i32
    %c0_i32_0 = arith.constant 0 : i32
    return %arg1, %arg0, %c0_i32 : i32, i32, i32
  }
}

module attributes {stable_mosaic.version = 11 : i64} {
  func.func @_matmul_bias_kernel(%arg0: i32, %arg1: memref<64x32xbf16, #tpu.memory_space<vmem>>, %arg2: memref<32x4xbf16, #tpu.memory_space<vmem>>, %arg3: memref<1x4xf32, #tpu.memory_space<vmem>>, %arg4: memref<64x4xf32, #tpu.memory_space<vmem>>) attributes {dimension_semantics = [#tpu.dimension_semantics<parallel>], iteration_bounds = array<i64: 1>, scalar_prefetch = 0 : i64, scratch_operands = 0 : i64, tpu.core_type = #tpu.core_type<tc>, window_params = [{transform_indices = @transform_0, window_bounds = array<i64: 64, 32>}, {pipeline_mode = #tpu.pipeline_mode<synchronous>, transform_indices = @transform_1, window_bounds = array<i64: 32, 4>}, {pipeline_mode = #tpu.pipeline_mode<synchronous>, transform_indices = @transform_2, window_bounds = array<i64: 1, 4>}, {transform_indices = @transform_3, window_bounds = array<i64: 64, 4>}]} {
    %c0 = arith.constant 0 : index
    %c0_0 = arith.constant 0 : index
    %0 = vector.load %arg1[%c0, %c0_0] : memref<64x32xbf16, #tpu.memory_space<vmem>>, vector<64x32xbf16>
    %c0_1 = arith.constant 0 : index
    %c0_2 = arith.constant 0 : index
    %1 = vector.load %arg2[%c0_1, %c0_2] : memref<32x4xbf16, #tpu.memory_space<vmem>>, vector<32x4xbf16>
    %cst = arith.constant dense<0.000000e+00> : vector<64x4xf32>
    %2 = tpu.matmul %0, %1, %cst {dimension_numbers = #tpu.dot_dimension_numbers<[1], [0], [0], [1], [0, 0, 1, 1], [], []>} : vector<64x32xbf16>, vector<32x4xbf16>, vector<64x4xf32> -> vector<64x4xf32>
    %c0_3 = arith.constant 0 : index
    %c0_4 = arith.constant 0 : index
    %3 = vector.load %arg3[%c0_3, %c0_4] : memref<1x4xf32, #tpu.memory_space<vmem>>, vector<1x4xf32>
    %4 = vector.broadcast %3 : vector<1x4xf32> to vector<64x4xf32>
    %5 = arith.addf %2, %4 : vector<64x4xf32>
    %c0_5 = arith.constant 0 : index
    %c0_6 = arith.constant 0 : index
    %6 = vector.load %arg4[%c0_5, %c0_6] : memref<64x4xf32, #tpu.memory_space<vmem>>, vector<64x4xf32>
    tpu.vector_store %arg4[%c0_5, %c0_6], %5 {strides = array<i32>} : memref<64x4xf32, #tpu.memory_space<vmem>>, vector<64x4xf32>,
    return
  }
  func.func @transform_0(%arg0: i32) -> (i32, i32) {
    %c0_i32 = arith.constant 0 : i32
    %c0_i32_0 = arith.constant 0 : i32
    return %arg0, %c0_i32 : i32, i32
  }
  func.func @transform_1(%arg0: i32) -> (i32, i32) {
    %c0_i32 = arith.constant 0 : i32
    %c0_i32_0 = arith.constant 0 : i32
    %c0_i32_1 = arith.constant 0 : i32
    return %c0_i32, %c0_i32_0 : i32, i32
  }
  func.func @transform_2(%arg0: i32) -> (i32, i32) {
    %c0_i32 = arith.constant 0 : i32
    %c0_i32_0 = arith.constant 0 : i32
    %c0_i32_1 = arith.constant 0 : i32
    return %c0_i32, %c0_i32_0 : i32, i32
  }
  func.func @transform_3(%arg0: i32) -> (i32, i32) {
    %c0_i32 = arith.constant 0 : i32
    %c0_i32_0 = arith.constant 0 : i32
    return %arg0, %c0_i32 : i32, i32
  }
}

</mosaic_0001>

<bundles_post_ra>
// kernel: transformer_rnn_forward.3
= control target key start
LH: loop header
LB: loop body
LE: loop exit
PB: predicated region body
PF: predicated region fallthrough
CT: control target
= control target key end

     0   :  { %vm66_vm0 = vcmask 261120   ;;  %vm144_vm1 = vcmask 785408   ;;  %s269_s1 = inlined_call_operand.vmem [shape: bf16[32,96], index: 1, kind: input, shape index: {}]   ;;  %s270_s0 = inlined_call_operand.vmem [shape: bf16[64,32], index: 0, kind: input, shape index: {}]   ;;  %s271_s2 = inlined_call_operand.vmem [shape: f32[1,96], index: 2, kind: input, shape index: {}]   ;;  %s272_s3 = inlined_call_operand.vmem [shape: f32[64,96], index: 3, kind: output, shape index: {}]  }
   0x1   :  { %v190_v0 = vld [vmem:[%s269_s1] sm:$0xff]   ;;  %v191_v1 = vld [vmem:[%s269_s1 + $0x8] sm:$0xff]   ;;  %v193_v3 = vld [vmem:[%s270_s0 + $0x10] sm:$0xff]  }
   0x2   :  { %174 = vmatprep.subr.bf16.mxu0 %v190_v0  ;;  %186 = vmatprep.subr.bf16.mxu1 %v190_v0  ;;  %v192_v2 = vld [vmem:[%s270_s0] sm:$0xff]   ;;  %v194_v4 = vld [vmem:[%s270_s0 + $0x8] sm:$0xff]   ;;  %v195_v5 = vld [vmem:[%s270_s0 + $0x18] sm:$0xff]  }
   0x3   :  { %175 = vmatpush3.bf16.msra.mxu0 %v190_v0  ;;  %188 = vmatpush3.bf16.msra.mxu1 %v190_v0  ;;  %v157_v6 = vld [vmem:[%s271_s2] ss:$0 sm:$0xff] }
   0x4   :  { %176 = vmatprep.subr.bf16.mxu0 %v191_v1  ;;  %187 = vmatprep.subr.bf16.mxu1 %v191_v1 }
   0x5   :  { %178 = vmatprep.mubr.msk.bf16.mxu0 %vm66_vm0, %v192_v2  ;;  %182 = vmatprep.mubr.msk.bf16.mxu1 %vm66_vm0, %v193_v3 }
   0x7   :  { %177 = vmatpush3.bf16.msra.mxu0 %v191_v1  ;;  %189 = vmatpush3.bf16.msra.mxu1 %v191_v1 }
   0xa   :  { %179 = vmatmul.mubr.msk.bf16.vlgmr.msra.gmra.mrb[0].mxu0 %vm66_vm0, %v194_v4  ;;  %183 = vmatmul.mubr.msk.bf16.vlgmr.msra.gmra.mrb[0].mxu1 %vm66_vm0, %v195_v5 }
  0xdd   :  { %v180_v7 = vpop.f32.mrb[0].mxu0  ;;  %v184_v8 = vpop.f32.mrb[0].mxu1 }
  0xde   :  { %v122_v9 = vadd.f32 %v180_v7, %v157_v6  ;;  %v138_v10 = vadd.f32 %v184_v8, %v157_v6  ;;  %v113_v11 = vpop.f32.mrb[1].mxu0  ;;  %v129_v12 = vpop.f32.mrb[1].mxu1 }
  0xdf   :  { %v114_v13 = vadd.f32 %v157_v6, %v113_v11  ;;  %v130_v14 = vadd.f32 %v157_v6, %v129_v12  ;;  %v181_v15 = vpop.f32.mrb[2].mxu0  ;;  %v185_v16 = vpop.f32.mrb[2].mxu1 }
  0xe0   :  { %147 = vst.msk [vmem:[%s272_s3 + $0x10] sm:$0xff] %vm144_vm1, %v122_v9  ;;  %151 = vst.msk [vmem:[%s272_s3 + $0x30] sm:$0xff] %vm144_vm1, %v138_v10  ;;  %v125_v17 = vadd.f32 %v181_v15, %v157_v6  ;;  %v141_v18 = vadd.f32 %v185_v16, %v157_v6  ;;  %v116_v19 = vpop.f32.mrb[3].mxu0  ;;  %v132_v20 = vpop.f32.mrb[3].mxu1 }
  0xe1   :  { %145 = vst.msk [vmem:[%s272_s3] sm:$0xff] %vm144_vm1, %v114_v13  ;;  %149 = vst.msk [vmem:[%s272_s3 + $0x20] sm:$0xff] %vm144_vm1, %v130_v14  ;;  %v117_v21 = vadd.f32 %v157_v6, %v116_v19  ;;  %v133_v22 = vadd.f32 %v157_v6, %v132_v20 }
  0xe2   :  { %148 = vst.msk [vmem:[%s272_s3 + $0x18] sm:$0xff] %vm144_vm1, %v125_v17  ;;  %152 = vst.msk [vmem:[%s272_s3 + $0x38] sm:$0xff] %vm144_vm1, %v141_v18 }
  0xe3   :  { %146 = vst.msk [vmem:[%s272_s3 + $0x8] sm:$0xff] %vm144_vm1, %v117_v21  ;;  %150 = vst.msk [vmem:[%s272_s3 + $0x28] sm:$0xff] %vm144_vm1, %v133_v22 }

// kernel: transformer_rnn_forward.5
= control target key start
LH: loop header
LB: loop body
LE: loop exit
PB: predicated region body
PF: predicated region fallthrough
CT: control target
= control target key end

     0   :  { %vm66_vm0 = vcmask 261120   ;;  %vm144_vm1 = vcmask 31744   ;;  %s269_s1 = inlined_call_operand.vmem [shape: bf16[32,4], index: 1, kind: input, shape index: {}]   ;;  %s270_s0 = inlined_call_operand.vmem [shape: bf16[64,32], index: 0, kind: input, shape index: {}]   ;;  %s271_s2 = inlined_call_operand.vmem [shape: f32[1,4], index: 2, kind: input, shape index: {}]   ;;  %s272_s3 = inlined_call_operand.vmem [shape: f32[64,4], index: 3, kind: output, shape index: {}]  }
   0x1   :  { %v190_v0 = vld [vmem:[%s269_s1] sm:$0xff]   ;;  %v191_v1 = vld [vmem:[%s269_s1 + $0x8] sm:$0xff]   ;;  %v193_v3 = vld [vmem:[%s270_s0 + $0x10] sm:$0xff]  }
   0x2   :  { %174 = vmatprep.subr.bf16.mxu0 %v190_v0  ;;  %186 = vmatprep.subr.bf16.mxu1 %v190_v0  ;;  %v192_v2 = vld [vmem:[%s270_s0] sm:$0xff]   ;;  %v194_v4 = vld [vmem:[%s270_s0 + $0x8] sm:$0xff]   ;;  %v195_v5 = vld [vmem:[%s270_s0 + $0x18] sm:$0xff]  }
   0x3   :  { %175 = vmatpush3.bf16.msra.mxu0 %v190_v0  ;;  %188 = vmatpush3.bf16.msra.mxu1 %v190_v0  ;;  %v157_v6 = vld [vmem:[%s271_s2] ss:$0 sm:$0xff] }
   0x4   :  { %176 = vmatprep.subr.bf16.mxu0 %v191_v1  ;;  %187 = vmatprep.subr.bf16.mxu1 %v191_v1 }
   0x5   :  { %178 = vmatprep.mubr.msk.bf16.mxu0 %vm66_vm0, %v192_v2  ;;  %182 = vmatprep.mubr.msk.bf16.mxu1 %vm66_vm0, %v193_v3 }
   0x7   :  { %177 = vmatpush3.bf16.msra.mxu0 %v191_v1  ;;  %189 = vmatpush3.bf16.msra.mxu1 %v191_v1 }
   0xa   :  { %179 = vmatmul.mubr.msk.bf16.vlgmr.msra.gmra.mrb[0].mxu0 %vm66_vm0, %v194_v4  ;;  %183 = vmatmul.mubr.msk.bf16.vlgmr.msra.gmra.mrb[0].mxu1 %vm66_vm0, %v195_v5 }
  0xdd   :  { %v180_v7 = vpop.f32.mrb[0].mxu0  ;;  %v184_v8 = vpop.f32.mrb[0].mxu1 }
  0xde   :  { %v122_v9 = vadd.f32 %v180_v7, %v157_v6  ;;  %v138_v10 = vadd.f32 %v184_v8, %v157_v6  ;;  %v113_v11 = vpop.f32.mrb[1].mxu0  ;;  %v129_v12 = vpop.f32.mrb[1].mxu1 }
  0xdf   :  { %v114_v13 = vadd.f32 %v157_v6, %v113_v11  ;;  %v130_v14 = vadd.f32 %v157_v6, %v129_v12  ;;  %v181_v15 = vpop.f32.mrb[2].mxu0  ;;  %v185_v16 = vpop.f32.mrb[2].mxu1 }
  0xe0   :  { %147 = vst.msk [vmem:[%s272_s3 + $0x10] sm:$0xff] %vm144_vm1, %v122_v9  ;;  %151 = vst.msk [vmem:[%s272_s3 + $0x30] sm:$0xff] %vm144_vm1, %v138_v10  ;;  %v125_v17 = vadd.f32 %v181_v15, %v157_v6  ;;  %v141_v18 = vadd.f32 %v185_v16, %v157_v6  ;;  %v116_v19 = vpop.f32.mrb[3].mxu0  ;;  %v132_v20 = vpop.f32.mrb[3].mxu1 }
  0xe1   :  { %145 = vst.msk [vmem:[%s272_s3] sm:$0xff] %vm144_vm1, %v114_v13  ;;  %149 = vst.msk [vmem:[%s272_s3 + $0x20] sm:$0xff] %vm144_vm1, %v130_v14  ;;  %v117_v21 = vadd.f32 %v157_v6, %v116_v19  ;;  %v133_v22 = vadd.f32 %v157_v6, %v132_v20 }
  0xe2   :  { %148 = vst.msk [vmem:[%s272_s3 + $0x18] sm:$0xff] %vm144_vm1, %v125_v17  ;;  %152 = vst.msk [vmem:[%s272_s3 + $0x38] sm:$0xff] %vm144_vm1, %v141_v18 }
  0xe3   :  { %146 = vst.msk [vmem:[%s272_s3 + $0x8] sm:$0xff] %vm144_vm1, %v117_v21  ;;  %150 = vst.msk [vmem:[%s272_s3 + $0x28] sm:$0xff] %vm144_vm1, %v133_v22 }

// kernel: transformer_rnn_forward.4
= control target key start
LH: loop header
LB: loop body
LE: loop exit
PB: predicated region body
PF: predicated region fallthrough
CT: control target
= control target key end

     0   :  { %v1069_v0 = vmov 0.0   ;;  %vm1070_vm0 = vmmov 0   ;;  %vm26_vm1 = vcmask 261120   ;;  %v1071_v2 = vmov 0   ;;  %s1073_s26 = smov 64   ;;  %s1381_s3 = inlined_call_operand.vmem [shape: bf16[32,96], index: 3, kind: input, shape index: {}]   ;;  %s1382_s2 = inlined_call_operand.vmem [shape: f32[8,32], index: 2, kind: input, shape index: {}]   ;;  %s1383_s0 = inlined_call_operand.vmem [shape: s32[8,1], index: 0, kind: input, shape index: {}]   ;;  %s1384_s4 = inlined_call_operand.vmem [shape: f32[1,96], index: 4, kind: input, shape index: {}]   ;;  %s1385_s1 = inlined_call_operand.vmem [shape: f32[8,8,96], index: 1, kind: input, shape index: {}]   ;;  %s1386_s5 = inlined_call_operand.vmem [shape: f32[8,8,32], index: 5, kind: output, shape index: {}]  }
   0x1   :  { %947 = vmatprep.subr.bf16.mxu0 %v1069_v0  ;;  %v1109_v1 = vld [vmem:[%s1381_s3] sm:$0xff]   ;;  %951 = vmatprep.mubr.msk.bf16.mxu0 %vm1070_vm0, %v1069_v0  ;;  %v1118_v3 = vld [vmem:[%s1381_s3 + $0x8] sm:$0xff]  }
   0x2   :  { %1017 = vset.pattern.permute.xlu1 %v1071_v2  ;;  %955 = vmatprep.subr.bf16.mxu1 %v1069_v0  ;;  %v25_v4 = vld [vmem:[%s1382_s2] sm:$0xff]  ;;  %v881_v47 = vld [vmem:[%s1385_s1 + $0x8] sm:$0xff] }
   0x3   :  { %948 = vmatpush3.bf16.msra.mxu0 %v1109_v1  ;;  %v1126_v5 = vld [vmem:[%s1383_s0] sm:$0xff]  ;;  %956 = vmatpush3.bf16.msra.mxu1 %v1109_v1  ;;  %27 = vst.msk [vmem:[#allocation2] sm:$0xff] %vm26_vm1, %v25_v4  ;;  %s1072_s0 = smov 32  }
   0x4   :  { %949 = vmatprep.subr.bf16.mxu0 %v1069_v0  ;;  %vm879_vm2 = vcmp.gt.s32.totalorder %v1126_v5, 0  ;;  %957 = vmatprep.subr.bf16.mxu1 %v1069_v0  ;;  %v1151_v10 = vld [vmem:[%s1384_s4] ss:$0 sm:$0xff]  ;;  %s1074_s4 = smov 96   ;;  %vm884_vm3 = vcmp.gt.s32.totalorder %v1126_v5, 1  ;;  %vm890_vm4 = vcmp.gt.s32.totalorder %v1126_v5, 2 }
   0x5   :  { %v880_v6 = vsel %vm879_vm2, 1.0, %v1069_v0  ;;  %959 = vmatprep.mubr.msk.bf16.mxu1 %vm1070_vm0, %v1069_v0  ;;  %1018 = vset.pattern.permute.xlu0 %v1071_v2  ;;  %v36_v16 = vld [vmem:[%s1385_s1] sm:$0xff]  ;;  %v885_v46 = vsel %vm884_vm3, 1.0, %v1069_v0  ;;  %vm896_vm5 = vcmp.gt.s32.totalorder %v1126_v5, 3  ;;  %vm902_vm6 = vcmp.gt.s32.totalorder %v1126_v5, 4 }
   0x6   :  { %v140_v7 = vsub.f32 1.0, %v880_v6  ;;  %v244_v55 = vsub.f32 1.0, %v885_v46  ;;  %vm908_vm7 = vcmp.gt.s32.totalorder %v1126_v5, 5  ;;  %vm914_vm8 = vcmp.gt.s32.totalorder %v1126_v5, 6 }
   0x7   :  { %950 = vmatpush3.bf16.msra.mxu0 %v1118_v3  ;;  %958 = vmatpush3.bf16.msra.mxu1 %v1118_v3  ;;  %vm920_vm9 = vcmp.gt.s32.totalorder %v1126_v5, 7 }
   0x8   :  { %143 = vperm.xlu1 %1017, %v140_v7   ;;  %963 = vmatprep.subr.bf16.mxu0 %v1069_v0 }
   0x9   :  { %971 = vmatprep.subr.bf16.mxu1 %v1069_v0 }
   0xa   :  { %v35_v8 = vld [vmem:[#allocation2] sm:$0xff] }
   0xb   :  { %v37_v9 = vpack.c.bf16 %v35_v8, %v35_v8 }
   0xc   :  { %136 = vperm.xlu1 %1017, %v880_v6  }
   0xd   :  { %952 = vmatmul.mubr.msk.bf16.vlgmr.msra.gmra.mrb[0].mxu0 %vm26_vm1, %v37_v9 }
   0xe   :  { %964 = vmatpush3.bf16.msra.mxu0 %v1109_v1  ;;  %967 = vmatprep.mubr.msk.bf16.mxu0 %vm1070_vm0, %v1069_v0 }
   0xf   :  { %965 = vmatprep.subr.bf16.mxu0 %v1069_v0 }
  0x10   :  { %125 = vrot.lane.b32.xlu1 %v35_v8, %s1072_s0 }
  0x12   :  { %966 = vmatpush3.bf16.msra.mxu0 %v1118_v3 }
  0x13   :  { %979 = vmatprep.subr.bf16.mxu0 %v1069_v0 }
  0x87   :  { %v144_v27 = vpop.permute.xlu1 %143 }
  0x88   :  { %v146_v28 = vmul.f32 %v144_v27, %v35_v8 }
  0x8b   :  { %v1161_v29 = vpop.permute.xlu1 %136 }
  0x8f   :  { %v126_v30 = vpop.permute.xlu1 %125 }
  0xe0   :  { %v94_v11 = vpop.f32.mrb[0].mxu0 }
  0xe1   :  { %v95_v12 = vadd.f32 %v1151_v10, %v94_v11  ;;  %v953_v13 = vpop.f32.mrb[1].mxu0 }
  0xe2   :  { %v97_v14 = vpop.f32.mrb[2].mxu0 }
  0xe3   :  { %108 = vrot.lane.b32.xlu0 %v95_v12, %s1073_s26  ;;  %v954_v15 = vpop.f32.mrb[3].mxu0  ;;  %v100_v17 = vadd.f32 %v95_v12, %v36_v16 }
  0xe5   :  { %v878_v18 = vmul.f32 -1.442695, %v100_v17  ;;  %v891_v17 = vsel %vm890_vm4, 1.0, %v1069_v0 }
  0xe7   :  { %1021 = vpow2.f32 %v878_v18  ;;  %v887_v18 = vld [vmem:[%s1385_s1 + $0x10] sm:$0xff] }
  0xf1   :  { %v1022_v19 = vpop.eup %1021 }
  0xf2   :  { %v104_v20 = vadd.f32 1.0, %v1022_v19 }
  0xf4   :  { %1023 = vrcp.f32 %v104_v20 }
  0xfe   :  { %v1024_v21 = vpop.eup %1023 }
  0xff   :  { %v118_v31 = vsub.f32 1.0, %v1024_v21  ;;  %v128_v33 = vmul.f32 %v1024_v21, %v126_v30 }
 0x155   :  { %v109_v22 = vpop.permute.xlu0 %108 }
 0x156   :  { %v111_v23 = vmul.f32 %v1024_v21, %v109_v22 }
 0x158   :  { %113 = vrot.lane.b32.xlu0 %v111_v23, %s1073_s26 }
 0x1ca   :  { %v114_v24 = vpop.permute.xlu0 %113 }
 0x1cb   :  { %v116_v25 = vadd.f32 %v114_v24, %v36_v16 }
 0x1cd   :  { %1025 = vtanh.f32 %v116_v25 }
 0x1d7   :  { %v1026_v26 = vpop.eup %1025 }
 0x1d8   :  { %120 = vrot.lane.b32.xlu0 %v1026_v26, %s1074_s4  ;;  %v345_v26 = vsub.f32 1.0, %v891_v17 }
 0x1dc   :  { %148 = vrot.lane.b32.xlu0 %v146_v28, %s1072_s0 }
 0x24a   :  { %v121_v32 = vpop.permute.xlu0 %120 }
 0x24b   :  { %v123_v34 = vmul.f32 %v121_v32, %v118_v31 }
 0x24d   :  { %v129_v35 = vadd.f32 %v128_v33, %v123_v34 }
 0x24e   :  { %v149_v36 = vpop.permute.xlu0 %148 }
 0x24f   :  { %v139_v37 = vmul.f32 %v1161_v29, %v129_v35 }
 0x251   :  { %v1164_v38 = vadd.f32 %v149_v36, %v139_v37 }
 0x253   :  { %v160_v39 = vpack.c.bf16 %v1164_v38, %v1164_v38 }
 0x255   :  { %162 = vrot.lane.b32.xlu1 %v160_v39, %s1074_s4 }
 0x2c7   :  { %v163_v40 = vpop.permute.xlu1 %162 }
 0x2c8   :  { %960 = vmatmul.mubr.msk.bf16.vlgmr.msra.gmra.mrb[0].mxu1 %vm26_vm1, %v163_v40 }
 0x2c9   :  { %972 = vmatpush3.bf16.msra.mxu1 %v1109_v1  ;;  %975 = vmatprep.mubr.msk.bf16.mxu1 %vm1070_vm0, %v1069_v0 }
 0x2ca   :  { %973 = vmatprep.subr.bf16.mxu1 %v1069_v0 }
 0x2cd   :  { %974 = vmatpush3.bf16.msra.mxu1 %v1118_v3 }
 0x2ce   :  { %987 = vmatprep.subr.bf16.mxu1 %v1069_v0 }
 0x39b   :  { %v201_v41 = vpop.f32.mrb[0].mxu1 }
 0x39c   :  { %v202_v42 = vadd.f32 %v1151_v10, %v201_v41  ;;  %v961_v43 = vpop.f32.mrb[1].mxu1 }
 0x39d   :  { %v204_v44 = vpop.f32.mrb[2].mxu1 }
 0x39e   :  { %215 = vrot.lane.b32.xlu0 %v202_v42, %s1073_s26  ;;  %v962_v45 = vpop.f32.mrb[3].mxu1  ;;  %v207_v48 = vadd.f32 %v881_v47, %v202_v42 }
 0x3a0   :  { %v883_v49 = vmul.f32 -1.442695, %v207_v48 }
 0x3a2   :  { %240 = vperm.xlu0 %1018, %v885_v46   ;;  %1027 = vpow2.f32 %v883_v49  ;;  %v897_v49 = vsel %vm896_vm5, 1.0, %v1069_v0 }
 0x3ac   :  { %v1028_v50 = vpop.eup %1027 }
 0x3ad   :  { %v211_v51 = vadd.f32 1.0, %v1028_v50  ;;  %v893_v50 = vld [vmem:[%s1385_s1 + $0x18] sm:$0xff] }
 0x3af   :  { %1029 = vrcp.f32 %v211_v51 }
 0x3b9   :  { %v1030_v52 = vpop.eup %1029 }
 0x3ba   :  { %v225_v60 = vsub.f32 1.0, %v1030_v52  ;;  %v231_v62 = vmul.f32 %v1030_v52, %v1164_v38 }
 0x410   :  { %v216_v53 = vpop.permute.xlu0 %215 }
 0x411   :  { %v218_v54 = vmul.f32 %v1030_v52, %v216_v53 }
 0x413   :  { %220 = vrot.lane.b32.xlu1 %v218_v54, %s1073_s26 }
 0x417   :  { %247 = vperm.xlu1 %1017, %v244_v55  }
 0x421   :  { %v1186_v2 = vpop.permute.xlu0 %240 }
 0x485   :  { %v221_v56 = vpop.permute.xlu1 %220 }
 0x486   :  { %v223_v57 = vadd.f32 %v881_v47, %v221_v56 }
 0x488   :  { %1031 = vtanh.f32 %v223_v57 }
 0x492   :  { %v1032_v58 = vpop.eup %1031 }
 0x493   :  { %227 = vrot.lane.b32.xlu1 %v1032_v58, %s1074_s4  ;;  %v446_v58 = vsub.f32 1.0, %v897_v49 }
 0x496   :  { %v248_v59 = vpop.permute.xlu1 %247 }
 0x497   :  { %v250_v6 = vmul.f32 %v248_v59, %v1164_v38 }
 0x505   :  { %v228_v61 = vpop.permute.xlu1 %227 }
 0x506   :  { %v230_v63 = vmul.f32 %v228_v61, %v225_v60 }
 0x508   :  { %v232_v4 = vadd.f32 %v231_v62, %v230_v63 }
 0x50a   :  { %v243_v7 = vmul.f32 %v1186_v2, %v232_v4 }
 0x50c   :  { %v1190_v8 = vadd.f32 %v250_v6, %v243_v7 }
 0x50e   :  { %v261_v9 = vpack.c.bf16 %v1190_v8, %v1190_v8 }
 0x510   :  { %263 = vrot.lane.b32.xlu0 %v261_v9, %s1074_s4 }
 0x582   :  { %v264_v11 = vpop.permute.xlu0 %263 }
 0x583   :  { %968 = vmatmul.mubr.msk.bf16.vlgmr.msra.gmra.mrb[4].mxu0 %vm26_vm1, %v264_v11 }
 0x584   :  { %980 = vmatpush3.bf16.msra.mxu0 %v1109_v1  ;;  %983 = vmatprep.mubr.msk.bf16.mxu0 %vm1070_vm0, %v1069_v0 }
 0x585   :  { %981 = vmatprep.subr.bf16.mxu0 %v1069_v0 }
 0x588   :  { %982 = vmatpush3.bf16.msra.mxu0 %v1118_v3 }
 0x589   :  { %995 = vmatprep.subr.bf16.mxu0 %v1069_v0 }
 0x656   :  { %v302_v12 = vpop.f32.mrb[4].mxu0 }
 0x657   :  { %v303_v13 = vadd.f32 %v1151_v10, %v302_v12  ;;  %v969_v14 = vpop.f32.mrb[5].mxu0 }
 0x658   :  { %v305_v15 = vpop.f32.mrb[6].mxu0 }
 0x659   :  { %316 = vrot.lane.b32.xlu1 %v303_v13, %s1073_s26  ;;  %v970_v16 = vpop.f32.mrb[7].mxu0  ;;  %v308_v19 = vadd.f32 %v887_v18, %v303_v13 }
 0x65b   :  { %v889_v20 = vmul.f32 -1.442695, %v308_v19 }
 0x65d   :  { %341 = vperm.xlu1 %1017, %v891_v17   ;;  %1033 = vpow2.f32 %v889_v20 }
 0x667   :  { %v1034_v21 = vpop.eup %1033 }
 0x668   :  { %v312_v22 = vadd.f32 1.0, %v1034_v21 }
 0x66a   :  { %1035 = vrcp.f32 %v312_v22  ;;  %v903_v22 = vsel %vm902_vm6, 1.0, %v1069_v0 }
 0x674   :  { %v1036_v23 = vpop.eup %1035 }
 0x675   :  { %v326_v32 = vsub.f32 1.0, %v1036_v23  ;;  %v332_v34 = vmul.f32 %v1036_v23, %v1190_v8 }
 0x6cb   :  { %v317_v24 = vpop.permute.xlu1 %316 }
 0x6cc   :  { %v319_v25 = vmul.f32 %v1036_v23, %v317_v24  ;;  %v899_v23 = vld [vmem:[%s1385_s1 + $0x20] sm:$0xff] }
 0x6ce   :  { %321 = vrot.lane.b32.xlu0 %v319_v25, %s1073_s26 }
 0x6d2   :  { %348 = vperm.xlu0 %1018, %v345_v26  }
 0x6dc   :  { %v1211_v31 = vpop.permute.xlu1 %341 }
 0x740   :  { %v322_v27 = vpop.permute.xlu0 %321 }
 0x741   :  { %v324_v28 = vadd.f32 %v887_v18, %v322_v27 }
 0x743   :  { %1037 = vtanh.f32 %v324_v28 }
 0x74d   :  { %v1038_v30 = vpop.eup %1037 }
 0x74e   :  { %328 = vrot.lane.b32.xlu1 %v1038_v30, %s1074_s4 }
 0x751   :  { %v349_v36 = vpop.permute.xlu0 %348 }
 0x752   :  { %v351_v39 = vmul.f32 %v349_v36, %v1190_v8 }
 0x7c0   :  { %v329_v33 = vpop.permute.xlu1 %328 }
 0x7c1   :  { %v331_v35 = vmul.f32 %v329_v33, %v326_v32  ;;  %v547_v33 = vsub.f32 1.0, %v903_v22 }
 0x7c3   :  { %v333_v37 = vadd.f32 %v332_v34, %v331_v35 }
 0x7c5   :  { %v344_v40 = vmul.f32 %v1211_v31, %v333_v37 }
 0x7c7   :  { %v1216_v41 = vadd.f32 %v351_v39, %v344_v40 }
 0x7c9   :  { %v362_v42 = vpack.c.bf16 %v1216_v41, %v1216_v41 }
 0x7cb   :  { %364 = vrot.lane.b32.xlu0 %v362_v42, %s1074_s4 }
 0x83d   :  { %v365_v43 = vpop.permute.xlu0 %364 }
 0x83e   :  { %976 = vmatmul.mubr.msk.bf16.vlgmr.msra.gmra.mrb[4].mxu1 %vm26_vm1, %v365_v43 }
 0x83f   :  { %988 = vmatpush3.bf16.msra.mxu1 %v1109_v1  ;;  %991 = vmatprep.mubr.msk.bf16.mxu1 %vm1070_vm0, %v1069_v0 }
 0x840   :  { %989 = vmatprep.subr.bf16.mxu1 %v1069_v0 }
 0x843   :  { %990 = vmatpush3.bf16.msra.mxu1 %v1118_v3 }
 0x844   :  { %1003 = vmatprep.subr.bf16.mxu1 %v1069_v0 }
 0x911   :  { %v403_v44 = vpop.f32.mrb[4].mxu1 }
 0x912   :  { %v404_v45 = vadd.f32 %v1151_v10, %v403_v44  ;;  %v977_v46 = vpop.f32.mrb[5].mxu1 }
 0x913   :  { %v406_v47 = vpop.f32.mrb[6].mxu1 }
 0x914   :  { %417 = vrot.lane.b32.xlu1 %v404_v45, %s1073_s26  ;;  %v978_v48 = vpop.f32.mrb[7].mxu1  ;;  %v409_v51 = vadd.f32 %v893_v50, %v404_v45 }
 0x916   :  { %v895_v52 = vmul.f32 -1.442695, %v409_v51 }
 0x918   :  { %442 = vperm.xlu1 %1017, %v897_v49   ;;  %1039 = vpow2.f32 %v895_v52 }
 0x922   :  { %v1040_v53 = vpop.eup %1039 }
 0x923   :  { %v413_v54 = vadd.f32 1.0, %v1040_v53 }
 0x925   :  { %1041 = vrcp.f32 %v413_v54 }
 0x92f   :  { %v1042_v55 = vpop.eup %1041 }
 0x930   :  { %v427_v63 = vsub.f32 1.0, %v1042_v55  ;;  %v433_v6 = vmul.f32 %v1042_v55, %v1216_v41 }
 0x986   :  { %v418_v56 = vpop.permute.xlu1 %417 }
 0x987   :  { %v420_v57 = vmul.f32 %v1042_v55, %v418_v56  ;;  %v909_v56 = vsel %vm908_vm7, 1.0, %v1069_v0 }
 0x989   :  { %422 = vrot.lane.b32.xlu0 %v420_v57, %s1073_s26 }
 0x98d   :  { %449 = vperm.xlu0 %1018, %v446_v58  }
 0x997   :  { %v1237_v62 = vpop.permute.xlu1 %442 }
 0x9fb   :  { %v423_v59 = vpop.permute.xlu0 %422 }
 0x9fc   :  { %v425_v60 = vadd.f32 %v893_v50, %v423_v59 }
 0x9fe   :  { %1043 = vtanh.f32 %v425_v60 }
 0xa08   :  { %v1044_v61 = vpop.eup %1043 }
 0xa09   :  { %429 = vrot.lane.b32.xlu1 %v1044_v61, %s1074_s4 }
 0xa0c   :  { %v450_v9 = vpop.permute.xlu0 %449 }
 0xa0d   :  { %v452_v12 = vmul.f32 %v450_v9, %v1216_v41 }
 0xa7b   :  { %v430_v4 = vpop.permute.xlu1 %429 }
 0xa7c   :  { %v432_v7 = vmul.f32 %v430_v4, %v427_v63  ;;  %v648_v4 = vsub.f32 1.0, %v909_v56 }
 0xa7e   :  { %v434_v11 = vadd.f32 %v433_v6, %v432_v7 }
 0xa80   :  { %v445_v13 = vmul.f32 %v1237_v62, %v434_v11 }
 0xa82   :  { %v1242_v14 = vadd.f32 %v452_v12, %v445_v13 }
 0xa84   :  { %v463_v15 = vpack.c.bf16 %v1242_v14, %v1242_v14 }
 0xa86   :  { %465 = vrot.lane.b32.xlu0 %v463_v15, %s1074_s4 }
 0xaf8   :  { %v466_v16 = vpop.permute.xlu0 %465 }
 0xaf9   :  { %984 = vmatmul.mubr.msk.bf16.vlgmr.msra.gmra.mrb[8].mxu0 %vm26_vm1, %v466_v16 }
 0xafa   :  { %996 = vmatpush3.bf16.msra.mxu0 %v1109_v1  ;;  %999 = vmatprep.mubr.msk.bf16.mxu0 %vm1070_vm0, %v1069_v0 }
 0xafb   :  { %997 = vmatprep.subr.bf16.mxu0 %v1069_v0 }
 0xafe   :  { %998 = vmatpush3.bf16.msra.mxu0 %v1118_v3 }
 0xbcc   :  { %v504_v17 = vpop.f32.mrb[8].mxu0 }
 0xbcd   :  { %v505_v18 = vadd.f32 %v1151_v10, %v504_v17  ;;  %v985_v19 = vpop.f32.mrb[9].mxu0 }
 0xbce   :  { %v507_v20 = vpop.f32.mrb[10].mxu0 }
 0xbcf   :  { %518 = vrot.lane.b32.xlu1 %v505_v18, %s1073_s26  ;;  %v986_v21 = vpop.f32.mrb[11].mxu0  ;;  %v510_v24 = vadd.f32 %v899_v23, %v505_v18 }
 0xbd1   :  { %v901_v25 = vmul.f32 -1.442695, %v510_v24 }
 0xbd3   :  { %543 = vperm.xlu1 %1017, %v903_v22   ;;  %1045 = vpow2.f32 %v901_v25 }
 0xbdd   :  { %v1046_v26 = vpop.eup %1045 }
 0xbde   :  { %v514_v27 = vadd.f32 1.0, %v1046_v26 }
 0xbe0   :  { %1047 = vrcp.f32 %v514_v27 }
 0xbea   :  { %v1048_v28 = vpop.eup %1047 }
 0xbeb   :  { %v528_v39 = vsub.f32 1.0, %v1048_v28  ;;  %v534_v42 = vmul.f32 %v1048_v28, %v1242_v14 }
 0xc41   :  { %v519_v30 = vpop.permute.xlu1 %518 }
 0xc42   :  { %v521_v32 = vmul.f32 %v1048_v28, %v519_v30  ;;  %v915_v30 = vsel %vm914_vm8, 1.0, %v1069_v0 }
 0xc44   :  { %523 = vrot.lane.b32.xlu0 %v521_v32, %s1073_s26  ;;  %v911_v32 = vld [vmem:[%s1385_s1 + $0x30] sm:$0xff] }
 0xc48   :  { %550 = vperm.xlu0 %1018, %v547_v33  }
 0xc52   :  { %v1262_v37 = vpop.permute.xlu1 %543 }
 0xcb6   :  { %v524_v34 = vpop.permute.xlu0 %523 }
 0xcb7   :  { %v526_v35 = vadd.f32 %v899_v23, %v524_v34 }
 0xcb9   :  { %1049 = vtanh.f32 %v526_v35 }
 0xcc3   :  { %v1050_v36 = vpop.eup %1049 }
 0xcc4   :  { %530 = vrot.lane.b32.xlu1 %v1050_v36, %s1074_s4 }
 0xcc7   :  { %v551_v44 = vpop.permute.xlu0 %550 }
 0xcc8   :  { %v553_v46 = vmul.f32 %v551_v44, %v1242_v14 }
 0xd36   :  { %v531_v40 = vpop.permute.xlu1 %530 }
 0xd37   :  { %v533_v43 = vmul.f32 %v531_v40, %v528_v39 }
 0xd39   :  { %v535_v45 = vadd.f32 %v534_v42, %v533_v43  ;;  %v749_v43 = vsub.f32 1.0, %v915_v30 }
 0xd3b   :  { %v546_v47 = vmul.f32 %v1262_v37, %v535_v45 }
 0xd3d   :  { %v1267_v48 = vadd.f32 %v553_v46, %v546_v47 }
 0xd3f   :  { %v564_v49 = vpack.c.bf16 %v1267_v48, %v1267_v48 }
 0xd41   :  { %566 = vrot.lane.b32.xlu0 %v564_v49, %s1074_s4 }
 0xdb3   :  { %v567_v50 = vpop.permute.xlu0 %566 }
 0xdb4   :  { %992 = vmatmul.mubr.msk.bf16.vlgmr.msra.gmra.mrb[8].mxu1 %vm26_vm1, %v567_v50 }
 0xdb5   :  { %1004 = vmatpush3.bf16.msra.mxu1 %v1109_v1  ;;  %1007 = vmatprep.mubr.msk.bf16.mxu1 %vm1070_vm0, %v1069_v0  ;;  %v905_v1 = vld [vmem:[%s1385_s1 + $0x28] sm:$0xff] }
 0xdb6   :  { %1005 = vmatprep.subr.bf16.mxu1 %v1069_v0 }
 0xdb9   :  { %1006 = vmatpush3.bf16.msra.mxu1 %v1118_v3 }
 0xe87   :  { %v605_v51 = vpop.f32.mrb[8].mxu1 }
 0xe88   :  { %v606_v52 = vadd.f32 %v1151_v10, %v605_v51  ;;  %v993_v53 = vpop.f32.mrb[9].mxu1 }
 0xe89   :  { %v608_v54 = vpop.f32.mrb[10].mxu1 }
 0xe8a   :  { %619 = vrot.lane.b32.xlu1 %v606_v52, %s1073_s26  ;;  %v994_v55 = vpop.f32.mrb[11].mxu1  ;;  %v611_v57 = vadd.f32 %v905_v1, %v606_v52 }
 0xe8c   :  { %v907_v58 = vmul.f32 -1.442695, %v611_v57 }
 0xe8e   :  { %644 = vperm.xlu1 %1017, %v909_v56   ;;  %1051 = vpow2.f32 %v907_v58 }
 0xe98   :  { %v1052_v3 = vpop.eup %1051 }
 0xe99   :  { %v615_v59 = vadd.f32 1.0, %v1052_v3 }
 0xe9b   :  { %1053 = vrcp.f32 %v615_v59 }
 0xea5   :  { %v1054_v60 = vpop.eup %1053 }
 0xea6   :  { %v629_v12 = vsub.f32 1.0, %v1054_v60  ;;  %v635_v15 = vmul.f32 %v1054_v60, %v1267_v48 }
 0xefc   :  { %v620_v61 = vpop.permute.xlu1 %619 }
 0xefd   :  { %v622_v63 = vmul.f32 %v1054_v60, %v620_v61 }
 0xeff   :  { %624 = vrot.lane.b32.xlu0 %v622_v63, %s1073_s26 }
 0xf03   :  { %651 = vperm.xlu0 %1018, %v648_v4   ;;  %v921_v4 = vsel %vm920_vm9, 1.0, %v1069_v0  ;;  %v152_v0 = vmul.f32 %v1164_v38, %v1161_v29  ;;  %v252_v38 = vmul.f32 %v1190_v8, %v1186_v2 }
 0xf0d   :  { %v1287_v11 = vpop.permute.xlu1 %644 }
 0xf71   :  { %v625_v6 = vpop.permute.xlu0 %624 }
 0xf72   :  { %v627_v7 = vadd.f32 %v905_v1, %v625_v6  ;;  %v917_v6 = vld [vmem:[%s1385_s1 + $0x38] sm:$0xff] }
 0xf74   :  { %1055 = vtanh.f32 %v627_v7 }
 0xf7e   :  { %v1056_v9 = vpop.eup %1055 }
 0xf7f   :  { %631 = vrot.lane.b32.xlu1 %v1056_v9, %s1074_s4 }
 0xf82   :  { %v652_v17 = vpop.permute.xlu0 %651 }
 0xf83   :  { %v654_v19 = vmul.f32 %v652_v17, %v1267_v48  ;;  %v353_v17 = vmul.f32 %v1216_v41, %v1211_v31  ;;  %v454_v41 = vmul.f32 %v1242_v14, %v1237_v62 }
 0xff1   :  { %v632_v13 = vpop.permute.xlu1 %631 }
 0xff2   :  { %v634_v16 = vmul.f32 %v632_v13, %v629_v12 }
 0xff4   :  { %v636_v18 = vadd.f32 %v635_v15, %v634_v16  ;;  %v850_v16 = vsub.f32 1.0, %v921_v4 }
 0xff6   :  { %v647_v20 = vmul.f32 %v1287_v11, %v636_v18  ;;  %v555_v18 = vmul.f32 %v1267_v48, %v1262_v37 }
 0xff8   :  { %v1292_v21 = vadd.f32 %v654_v19, %v647_v20 }
 0xffa   :  { %v665_v22 = vpack.c.bf16 %v1292_v21, %v1292_v21  ;;  %v656_v48 = vmul.f32 %v1292_v21, %v1287_v11 }
 0xffc   :  { %667 = vrot.lane.b32.xlu0 %v665_v22, %s1074_s4 }
0x106e   :  { %v668_v23 = vpop.permute.xlu0 %667 }
0x106f   :  { %1000 = vmatmul.mubr.msk.bf16.vlgmr.msra.gmra.mrb[12].mxu0 %vm26_vm1, %v668_v23 }
0x1142   :  { %v706_v24 = vpop.f32.mrb[12].mxu0 }
0x1143   :  { %v707_v25 = vadd.f32 %v1151_v10, %v706_v24  ;;  %v1001_v26 = vpop.f32.mrb[13].mxu0 }
0x1144   :  { %v709_v27 = vpop.f32.mrb[14].mxu0 }
0x1145   :  { %720 = vrot.lane.b32.xlu1 %v707_v25, %s1073_s26  ;;  %v1002_v28 = vpop.f32.mrb[15].mxu0  ;;  %v712_v33 = vadd.f32 %v911_v32, %v707_v25 }
0x1147   :  { %v913_v34 = vmul.f32 -1.442695, %v712_v33 }
0x1149   :  { %745 = vperm.xlu1 %1017, %v915_v30   ;;  %1057 = vpow2.f32 %v913_v34 }
0x1153   :  { %v1058_v35 = vpop.eup %1057 }
0x1154   :  { %v716_v36 = vadd.f32 1.0, %v1058_v35 }
0x1156   :  { %1059 = vrcp.f32 %v716_v36 }
0x1160   :  { %v1060_v39 = vpop.eup %1059 }
0x1161   :  { %v730_v49 = vsub.f32 1.0, %v1060_v39  ;;  %v736_v51 = vmul.f32 %v1060_v39, %v1292_v21 }
0x11b7   :  { %v721_v40 = vpop.permute.xlu1 %720 }
0x11b8   :  { %v723_v42 = vmul.f32 %v1060_v39, %v721_v40 }
0x11ba   :  { %725 = vrot.lane.b32.xlu0 %v723_v42, %s1073_s26 }
0x11be   :  { %752 = vperm.xlu0 %1018, %v749_v43  }
0x11c8   :  { %v746_v47 = vpop.permute.xlu1 %745 }
0x122c   :  { %v726_v44 = vpop.permute.xlu0 %725 }
0x122d   :  { %v728_v45 = vadd.f32 %v911_v32, %v726_v44 }
0x122f   :  { %1061 = vtanh.f32 %v728_v45 }
0x1239   :  { %v1062_v46 = vpop.eup %1061 }
0x123a   :  { %732 = vrot.lane.b32.xlu1 %v1062_v46, %s1074_s4 }
0x123d   :  { %v753_v53 = vpop.permute.xlu0 %752 }
0x123e   :  { %v755_v55 = vmul.f32 %v753_v53, %v1292_v21 }
0x12ac   :  { %v733_v50 = vpop.permute.xlu1 %732 }
0x12ad   :  { %v735_v52 = vmul.f32 %v733_v50, %v730_v49 }
0x12af   :  { %v737_v54 = vadd.f32 %v736_v51, %v735_v52 }
0x12b1   :  { %v748_v56 = vmul.f32 %v746_v47, %v737_v54 }
0x12b3   :  { %v1309_v1 = vadd.f32 %v755_v55, %v748_v56 }
0x12b5   :  { %v766_v57 = vpack.c.bf16 %v1309_v1, %v1309_v1  ;;  %v757_v19 = vmul.f32 %v1309_v1, %v746_v47 }
0x12b7   :  { %768 = vrot.lane.b32.xlu0 %v766_v57, %s1074_s4 }
0x1329   :  { %v769_v58 = vpop.permute.xlu0 %768 }
0x132a   :  { %1008 = vmatmul.mubr.msk.bf16.vlgmr.msra.gmra.mrb[12].mxu1 %vm26_vm1, %v769_v58 }
0x13fd   :  { %v807_v3 = vpop.f32.mrb[12].mxu1 }
0x13fe   :  { %v808_v59 = vadd.f32 %v1151_v10, %v807_v3  ;;  %v1009_v60 = vpop.f32.mrb[13].mxu1 }
0x13ff   :  { %v810_v61 = vpop.f32.mrb[14].mxu1 }
0x1400   :  { %821 = vrot.lane.b32.xlu1 %v808_v59, %s1073_s26  ;;  %v1010_v63 = vpop.f32.mrb[15].mxu1  ;;  %v813_v7 = vadd.f32 %v917_v6, %v808_v59 }
0x1402   :  { %v919_v9 = vmul.f32 -1.442695, %v813_v7 }
0x1404   :  { %846 = vperm.xlu1 %1017, %v921_v4   ;;  %1063 = vpow2.f32 %v919_v9 }
0x140e   :  { %v1064_v12 = vpop.eup %1063 }
0x140f   :  { %v817_v13 = vadd.f32 1.0, %v1064_v12 }
0x1411   :  { %1065 = vrcp.f32 %v817_v13 }
0x141b   :  { %v1066_v10 = vpop.eup %1065 }
0x141c   :  { %v831_v14 = vsub.f32 1.0, %v1066_v10  ;;  %v837_v21 = vmul.f32 %v1066_v10, %v1309_v1 }
0x1472   :  { %v822_v15 = vpop.permute.xlu1 %821 }
0x1473   :  { %v824_v5 = vmul.f32 %v1066_v10, %v822_v15 }
0x1475   :  { %826 = vrot.lane.b32.xlu0 %v824_v5, %s1073_s26 }
0x1479   :  { %853 = vperm.xlu0 %1018, %v850_v16  }
0x147d   :  { %154 = vrot.lane.b32.xlu0 %v152_v0, %s1074_s4 }
0x1481   :  { %355 = vrot.lane.b32.xlu0 %v353_v17, %s1074_s4 }
0x1483   :  { %v847_v62 = vpop.permute.xlu1 %846 }
0x1485   :  { %557 = vrot.lane.b32.xlu0 %v555_v18, %s1074_s4 }
0x1489   :  { %759 = vrot.lane.b32.xlu0 %v757_v19, %s1074_s4 }
0x14e7   :  { %v827_v20 = vpop.permute.xlu0 %826 }
0x14e8   :  { %v829_v22 = vadd.f32 %v917_v6, %v827_v20 }
0x14ea   :  { %1067 = vtanh.f32 %v829_v22 }
0x14f4   :  { %v1068_v29 = vpop.eup %1067 }
0x14f5   :  { %833 = vrot.lane.b32.xlu1 %v1068_v29, %s1074_s4 }
0x14f8   :  { %v854_v31 = vpop.permute.xlu0 %853 }
0x14f9   :  { %254 = vrot.lane.b32.xlu1 %v252_v38, %s1074_s4  ;;  %v856_v27 = vmul.f32 %v854_v31, %v1309_v1 }
0x14fc   :  { %v155_v37 = vpop.permute.xlu0 %154 }
0x14fd   :  { %157 = vst.msk [vmem:[%s1386_s5] sm:$0xff] %vm26_vm1, %v155_v37  ;;  %456 = vrot.lane.b32.xlu1 %v454_v41, %s1074_s4 }
0x1500   :  { %v356_v23 = vpop.permute.xlu0 %355 }
0x1501   :  { %892 = vst.msk [vmem:[%s1386_s5 + $0x10] sm:$0xff] %vm26_vm1, %v356_v23  ;;  %658 = vrot.lane.b32.xlu1 %v656_v48, %s1074_s4 }
0x1504   :  { %v558_v2 = vpop.permute.xlu0 %557 }
0x1505   :  { %904 = vst.msk [vmem:[%s1386_s5 + $0x20] sm:$0xff] %vm26_vm1, %v558_v2 }
0x1508   :  { %v760_v8 = vpop.permute.xlu0 %759 }
0x1509   :  { %916 = vst.msk [vmem:[%s1386_s5 + $0x30] sm:$0xff] %vm26_vm1, %v760_v8 }
0x1567   :  { %v834_v11 = vpop.permute.xlu1 %833 }
0x1568   :  { %v836_v24 = vmul.f32 %v834_v11, %v831_v14 }
0x156a   :  { %v838_v25 = vadd.f32 %v837_v21, %v836_v24 }
0x156b   :  { %v255_v26 = vpop.permute.xlu1 %254 }
0x156c   :  { %v849_v28 = vmul.f32 %v847_v62, %v838_v25  ;;  %886 = vst.msk [vmem:[%s1386_s5 + $0x8] sm:$0xff] %vm26_vm1, %v255_v26 }
0x156e   :  { %v857_v30 = vadd.f32 %v856_v27, %v849_v28 }
0x156f   :  { %v457_v32 = vpop.permute.xlu1 %456 }
0x1570   :  { %898 = vst.msk [vmem:[%s1386_s5 + $0x18] sm:$0xff] %vm26_vm1, %v457_v32  ;;  %866 = vrot.lane.b32.xlu0 %v857_v30, %s1074_s4  ;;  %v858_v33 = vmul.f32 %v857_v30, %v847_v62 }
0x1572   :  { %860 = vrot.lane.b32.xlu1 %v858_v33, %s1074_s4 }
0x1573   :  { %v659_v34 = vpop.permute.xlu1 %658 }
0x1574   :  { %910 = vst.msk [vmem:[%s1386_s5 + $0x28] sm:$0xff] %vm26_vm1, %v659_v34 }
0x15e2   :  { %v867_v35 = vpop.permute.xlu0 %866 }
0x15e3   :  { %869 = vst.msk [vmem:[#allocation2] sm:$0xff] %vm26_vm1, %v867_v35 }
0x15e4   :  { %v861_v36 = vpop.permute.xlu1 %860 }
0x15e5   :  { %922 = vst.msk [vmem:[%s1386_s5 + $0x38] sm:$0xff] %vm26_vm1, %v861_v36 }

</bundles_post_ra>
